<compile_context>
chip_gen: v7x
topology: tpu7x:2x2x1
jax: 0.10.0
libtpu: 0.0.40
codegen_flags: <defaults>
</compile_context>

<pallas_src>
import functools

import jax
import jax.numpy as jnp
from jax import lax
from jax.experimental import pallas as pl
from jax.experimental.pallas import tpu as pltpu


def _round_up(x, m):
    return (x + m - 1) // m * m


def _gru_kernel(lens_smem, gi_ref, h0_ref, lens_ref, whh_ref, bhn_ref,
                out_ref, hT_ref, h_scratch):
    """One grid step == `time_chunk` timesteps of the GRU for one batch tile.

    lens_smem: (B_pad,)              int32 lengths in SMEM (scalar prefetch)
    gi_ref  : (TC, 3, BT, Hp) f32    precomputed input projection, gate-major [r, z, n]
    h0_ref  : (1, BT, Hp)     f32    initial hidden state (this batch tile)
    lens_ref: (BT, 1)         int32  lengths (VMEM copy for the vector mask)
    whh_ref : (3, Hp, Hp)            W_hh per gate, already transposed for h @ W
    bhn_ref : (1, Hp)         f32    b_hh of the n gate (r/z parts folded into gi)
    out_ref : (TC, BT, Hp)    f32    outputs (zero past each sequence length)
    hT_ref  : (1, BT, Hp)     f32    final hidden state
    h_scratch: VMEM (BT, Hp)  f32    carried hidden state
    """
    b = pl.program_id(0)                  # batch tile (parallel)
    c = pl.program_id(1)                  # time chunk (sequential)
    time_chunk = gi_ref.shape[0]
    batch_tile = h0_ref.shape[1]

    @pl.when(c == 0)
    def _init():
        h_scratch[...] = h0_ref[0]

    chunk_start = c * time_chunk
    # Lengths are sorted descending (pack_padded_sequence enforce_sorted=True), so the first
    # entry of this batch tile is its max length.
    tile_max_len = lens_smem[b * batch_tile]

    @pl.when(chunk_start < tile_max_len)
    def _compute():
        lens_vec = lens_ref[...]          # (BT, 1) int32
        bhn = bhn_ref[...]                # (1, Hp)

        def step(i, h):
            t = chunk_start + i
            gi_t = gi_ref[i]              # (3, BT, Hp), gate-major
            h_mm = h.astype(whh_ref.dtype)
            gh_r = jnp.dot(h_mm, whh_ref[0], preferred_element_type=jnp.float32)
            gh_z = jnp.dot(h_mm, whh_ref[1], preferred_element_type=jnp.float32)
            gh_n = jnp.dot(h_mm, whh_ref[2], preferred_element_type=jnp.float32)
            r = jax.nn.sigmoid(gi_t[0] + gh_r)
            z = jax.nn.sigmoid(gi_t[1] + gh_z)
            n = jnp.tanh(gi_t[2] + r * (gh_n + bhn))
            h_new = (1.0 - z) * n + z * h
            # pack_padded semantics: stop updating past each length; zero-fill outputs.
            valid = t < lens_vec          # (BT, 1) bool, broadcasts over Hp
            h = jnp.where(valid, h_new, h)
            out_ref[i] = jnp.where(valid, h, 0.0).astype(out_ref.dtype)
            return h

        h_scratch[...] = lax.fori_loop(0, time_chunk, step, h_scratch[...],
                                       unroll=True)

    @pl.when(chunk_start >= tile_max_len)
    def _skip():
        # Whole chunk is past every sequence in this batch tile: zero-fill, keep hidden.
        out_ref[...] = jnp.zeros_like(out_ref)

    @pl.when(c == pl.num_programs(1) - 1)
    def _finalize():
        hT_ref[0] = h_scratch[...].astype(hT_ref.dtype)


@functools.partial(jax.jit,
                   static_argnames=("time_chunk", "batch_tile", "use_bf16_matmul"))
def encoder_gru_forward(tokens, input_len, hidden, embedding_table,
                        w_ih, w_hh, b_ih, b_hh, *,
                        time_chunk=8, batch_tile=8, use_bf16_matmul=False):
    """tokens: (T, B) int32; input_len: (B,) int32 (descending, max == T);
    hidden: (1, B, H) f32; embedding_table: (V, H) f32;
    w_ih, w_hh: (3H, H); b_ih, b_hh: (3H,)   (PyTorch GRU parameter layout)."""
    T, B = tokens.shape
    H = hidden.shape[-1]
    assert batch_tile % 8 == 0, "batch_tile must be a multiple of the sublane width (8)"

    mm_dtype = jnp.bfloat16 if use_bf16_matmul else jnp.float32

    # ---- non-recurrent work hoisted out of the serial loop (plain XLA) ----
    emb = jnp.take(embedding_table, tokens, axis=0).astype(jnp.float32)      # (T, B, H)
    w_ih_g = w_ih.reshape(3, H, H).astype(jnp.float32)                       # (gate, out, in)
    gi = jnp.einsum('tbi,goi->tgbo', emb, w_ih_g)                            # (T, 3, B, H)
    b_ih_g = b_ih.reshape(3, H).astype(jnp.float32)
    b_hh_g = b_hh.reshape(3, H).astype(jnp.float32)
    bias = b_ih_g.at[:2].add(b_hh_g[:2])           # fold b_ih and the r/z parts of b_hh
    gi = gi + bias[None, :, None, :]

    # ---- pad to (8, 128)-aligned, gate-major, lane-dense layouts ----
    T_pad = _round_up(T, time_chunk)
    B_pad = _round_up(B, batch_tile)
    H_pad = _round_up(H, 128)

    gi_p = jnp.pad(gi, ((0, T_pad - T), (0, 0), (0, B_pad - B), (0, H_pad - H)))
    h0_p = jnp.pad(hidden.astype(jnp.float32),
                   ((0, 0), (0, B_pad - B), (0, H_pad - H)))
    whh_g = jnp.transpose(w_hh.reshape(3, H, H), (0, 2, 1)).astype(jnp.float32)
    whh_p = jnp.pad(whh_g, ((0, 0), (0, H_pad - H), (0, H_pad - H))).astype(mm_dtype)
    bhn_p = jnp.pad(b_hh[2 * H:].reshape(1, H).astype(jnp.float32),
                    ((0, 0), (0, H_pad - H)))
    lens_p = jnp.pad(input_len.astype(jnp.int32), (0, B_pad - B))
    lens_col = lens_p.reshape(B_pad, 1)

    num_bt = B_pad // batch_tile
    num_tc = T_pad // time_chunk

    out_p, hT_p = pl.pallas_call(
        _gru_kernel,
        out_shape=(
            jax.ShapeDtypeStruct((T_pad, B_pad, H_pad), jnp.float32),
            jax.ShapeDtypeStruct((1, B_pad, H_pad), jnp.float32),
        ),
        grid_spec=pltpu.PrefetchScalarGridSpec(
            num_scalar_prefetch=1,
            grid=(num_bt, num_tc),
            in_specs=[
                pl.BlockSpec((time_chunk, 3, batch_tile, H_pad),
                             lambda b, c, lens: (c, 0, b, 0)),        # gi[t-chunk]
                pl.BlockSpec((1, batch_tile, H_pad),
                             lambda b, c, lens: (0, b, 0)),           # h0
                pl.BlockSpec((batch_tile, 1),
                             lambda b, c, lens: (b, 0)),              # lengths (VMEM)
                pl.BlockSpec((3, H_pad, H_pad),
                             lambda b, c, lens: (0, 0, 0)),           # W_hh (gate-major)
                pl.BlockSpec((1, H_pad),
                             lambda b, c, lens: (0, 0)),              # b_hn
            ],
            out_specs=[
                pl.BlockSpec((time_chunk, batch_tile, H_pad),
                             lambda b, c, lens: (c, b, 0)),           # output
                pl.BlockSpec((1, batch_tile, H_pad),
                             lambda b, c, lens: (0, b, 0)),           # final hidden
            ],
            scratch_shapes=[pltpu.VMEM((batch_tile, H_pad), jnp.float32)],
        ),
        compiler_params=pltpu.CompilerParams(
            dimension_semantics=("parallel", "arbitrary")),
    )(lens_p, gi_p, h0_p, lens_col, whh_p, bhn_p)

    # TODO(synk): pad_packed_sequence would trim the output to max(input_len); here we assume
    # max(input_len) == T (the usual case when padding to the batch max length).
    return out_p[:T, :B, :H], hT_p[:, :B, :H]


def _reference_forward(tokens, input_len, hidden, embedding_table, w_ih, w_hh, b_ih, b_hh):
    """Pure-JAX reference of the same semantics (for validation)."""
    T, B = tokens.shape
    H = hidden.shape[-1]
    emb = jnp.take(embedding_table, tokens, axis=0)
    h = hidden[0]
    outs = []
    for t in range(T):
        x = emb[t]
        gi = x @ w_ih.T + b_ih
        gh = h @ w_hh.T + b_hh
        r = jax.nn.sigmoid(gi[:, :H] + gh[:, :H])
        z = jax.nn.sigmoid(gi[:, H:2 * H] + gh[:, H:2 * H])
        n = jnp.tanh(gi[:, 2 * H:] + r * gh[:, 2 * H:])
        h_new = (1.0 - z) * n + z * h
        valid = (t < input_len)[:, None]
        h = jnp.where(valid, h_new, h)
        outs.append(jnp.where(valid, h, 0.0))
    return jnp.stack(outs, axis=0), h[None]


if __name__ == "__main__":
    T, B, H, V = 8, 2, 32, 50   # seq_len, batch, hidden_size, vocab

    key = jax.random.PRNGKey(0)
    k_emb, k_tok, k_h0, k_wih, k_whh, k_bih, k_bhh = jax.random.split(key, 7)

    bound = 1.0 / jnp.sqrt(H)
    embedding_table = jax.random.normal(k_emb, (V, H), jnp.float32)
    tokens = jax.random.randint(k_tok, (T, B), 0, V, jnp.int32)
    hidden0 = jax.random.normal(k_h0, (1, B, H), jnp.float32)
    w_ih = jax.random.uniform(k_wih, (3 * H, H), jnp.float32, -bound, bound)
    w_hh = jax.random.uniform(k_whh, (3 * H, H), jnp.float32, -bound, bound)
    b_ih = jax.random.uniform(k_bih, (3 * H,), jnp.float32, -bound, bound)
    b_hh = jax.random.uniform(k_bhh, (3 * H,), jnp.float32, -bound, bound)

    # lengths must be sorted descending (pack_padded_sequence enforce_sorted=True).
    input_len = jnp.array([8, 5], jnp.int32)

    # --- f32 path, 2 time chunks (exercises the cross-chunk hidden-state carry) ---
    out, h_final = encoder_gru_forward(tokens, input_len, hidden0, embedding_table,
                                       w_ih, w_hh, b_ih, b_hh, time_chunk=4)
    jax.block_until_ready((out, h_final))
    ref_out, ref_h = _reference_forward(tokens, input_len, hidden0, embedding_table,
                                        w_ih, w_hh, b_ih, b_hh)
    assert jnp.allclose(out, ref_out, atol=1e-5, rtol=1e-5)
    assert jnp.allclose(h_final, ref_h, atol=1e-5, rtol=1e-5)

    # --- short sequences (exercises the whole-chunk skip branch) ---
    short_len = jnp.array([4, 2], jnp.int32)
    out_s, h_s = encoder_gru_forward(tokens, short_len, hidden0, embedding_table,
                                     w_ih, w_hh, b_ih, b_hh, time_chunk=4)
    jax.block_until_ready((out_s, h_s))
    ref_out_s, ref_h_s = _reference_forward(tokens, short_len, hidden0, embedding_table,
                                            w_ih, w_hh, b_ih, b_hh)
    assert jnp.allclose(out_s, ref_out_s, atol=1e-5, rtol=1e-5)
    assert jnp.allclose(h_s, ref_h_s, atol=1e-5, rtol=1e-5)

    # --- bf16 recurrent weights (v6e/v7x fast path), loose tolerance ---
    out_b, h_b = encoder_gru_forward(tokens, input_len, hidden0, embedding_table,
                                     w_ih, w_hh, b_ih, b_hh, time_chunk=4,
                                     use_bf16_matmul=True)
    jax.block_until_ready((out_b, h_b))
    assert jnp.allclose(out_b, ref_out, atol=1e-1, rtol=1e-1)
    assert jnp.allclose(h_b, ref_h, atol=1e-1, rtol=1e-1)

    print("KERNEL_OK")
</pallas_src>

<mosaic_0001>
module attributes {stable_mosaic.version = 11 : i64} {
  func.func @_gru_kernel(%arg0: i32, %arg1: i32, %arg2: memref<8xi32, #tpu.memory_space<smem>>, %arg3: memref<4x3x8x128xf32, #tpu.memory_space<vmem>>, %arg4: memref<1x8x128xf32, #tpu.memory_space<vmem>>, %arg5: memref<8x1xi32, #tpu.memory_space<vmem>>, %arg6: memref<3x128x128xf32, #tpu.memory_space<vmem>>, %arg7: memref<1x128xf32, #tpu.memory_space<vmem>>, %arg8: memref<4x8x128xf32, #tpu.memory_space<vmem>>, %arg9: memref<1x8x128xf32, #tpu.memory_space<vmem>>, %arg10: memref<8x128xf32, #tpu.memory_space<vmem>>) attributes {dimension_semantics = [#tpu.dimension_semantics<parallel>, #tpu.dimension_semantics<arbitrary>], iteration_bounds = array<i64: 1, 2>, scalar_prefetch = 1 : i64, scratch_operands = 1 : i64, tpu.core_type = #tpu.core_type<tc>, window_params = [{transform_indices = @transform_0, window_bounds = array<i64: 4, 3, 8, 128>}, {transform_indices = @transform_1, window_bounds = array<i64: 1, 8, 128>}, {transform_indices = @transform_2, window_bounds = array<i64: 8, 1>}, {pipeline_mode = #tpu.pipeline_mode<synchronous>, transform_indices = @transform_3, window_bounds = array<i64: 3, 128, 128>}, {pipeline_mode = #tpu.pipeline_mode<synchronous>, transform_indices = @transform_4, window_bounds = array<i64: 1, 128>}, {transform_indices = @transform_5, window_bounds = array<i64: 4, 8, 128>}, {transform_indices = @transform_6, window_bounds = array<i64: 1, 8, 128>}]} {
    %c0_i32 = arith.constant 0 : i32
    %0 = arith.cmpi eq, %arg1, %c0_i32 : i32
    %1 = arith.extui %0 : i1 to i32
    %c0_i32_0 = arith.constant 0 : i32
    %2 = arith.cmpi ne, %1, %c0_i32_0 : i32
    scf.if %2 {
      %c0 = arith.constant 0 : index
      %c0_4 = arith.constant 0 : index
      %c0_5 = arith.constant 0 : index
      %16 = vector.load %arg4[%c0, %c0_4, %c0_5] : memref<1x8x128xf32, #tpu.memory_space<vmem>>, vector<1x8x128xf32>
      %17 = vector.shape_cast %16 : vector<1x8x128xf32> to vector<8x128xf32>
      %c0_6 = arith.constant 0 : index
      %c0_7 = arith.constant 0 : index
      %18 = vector.load %arg10[%c0_6, %c0_7] : memref<8x128xf32, #tpu.memory_space<vmem>>, vector<8x128xf32>
      tpu.vector_store %arg10[%c0_6, %c0_7], %17 {strides = array<i32>} : memref<8x128xf32, #tpu.memory_space<vmem>>, vector<8x128xf32>,
    } else {
    }
    %c4_i32 = arith.constant 4 : i32
    %3 = arith.muli %arg1, %c4_i32 : i32
    %c8_i32 = arith.constant 8 : i32
    %4 = arith.muli %arg0, %c8_i32 : i32
    %5 = arith.index_cast %4 : i32 to index
    %6 = memref.load %arg2[%5] : memref<8xi32, #tpu.memory_space<smem>>
    %7 = arith.cmpi slt, %3, %6 : i32
    %8 = arith.extui %7 : i1 to i32
    %c0_i32_1 = arith.constant 0 : i32
    %9 = arith.cmpi ne, %8, %c0_i32_1 : i32
    scf.if %9 {
      %c0 = arith.constant 0 : index
      %c0_4 = arith.constant 0 : index
      %16 = vector.load %arg5[%c0, %c0_4] : memref<8x1xi32, #tpu.memory_space<vmem>>, vector<8x1xi32>
      %c0_5 = arith.constant 0 : index
      %c0_6 = arith.constant 0 : index
      %17 = vector.load %arg7[%c0_5, %c0_6] : memref<1x128xf32, #tpu.memory_space<vmem>>, vector<1x128xf32>
      %c0_7 = arith.constant 0 : index
      %c0_8 = arith.constant 0 : index
      %18 = vector.load %arg10[%c0_7, %c0_8] : memref<8x128xf32, #tpu.memory_space<vmem>>, vector<8x128xf32>
      %c0_i32_9 = arith.constant 0 : i32
      %19 = arith.addi %3, %c0_i32_9 : i32
      %20 = arith.index_cast %c0_i32_9 : i32 to index
      %c0_10 = arith.constant 0 : index
      %c0_11 = arith.constant 0 : index
      %c0_12 = arith.constant 0 : index
      %21 = vector.load %arg3[%20, %c0_10, %c0_11, %c0_12] : memref<4x3x8x128xf32, #tpu.memory_space<vmem>>, vector<1x3x8x128xf32>
      %22 = vector.shape_cast %21 : vector<1x3x8x128xf32> to vector<3x8x128xf32>
      %c0_13 = arith.constant 0 : index
      %c0_14 = arith.constant 0 : index
      %c0_15 = arith.constant 0 : index
      %23 = vector.load %arg6[%c0_13, %c0_14, %c0_15] : memref<3x128x128xf32, #tpu.memory_space<vmem>>, vector<1x128x128xf32>
      %24 = vector.shape_cast %23 : vector<1x128x128xf32> to vector<128x128xf32>
      %cst = arith.constant dense<0.000000e+00> : vector<8x128xf32>
      %25 = tpu.matmul %18, %24, %cst {dimension_numbers = #tpu.dot_dimension_numbers<[1], [0], [0], [1], [0, 0, 1, 1], [], []>} : vector<8x128xf32>, vector<128x128xf32>, vector<8x128xf32> -> vector<8x128xf32>
      %c1 = arith.constant 1 : index
      %c0_16 = arith.constant 0 : index
      %c0_17 = arith.constant 0 : index
      %26 = vector.load %arg6[%c1, %c0_16, %c0_17] : memref<3x128x128xf32, #tpu.memory_space<vmem>>, vector<1x128x128xf32>
      %27 = vector.shape_cast %26 : vector<1x128x128xf32> to vector<128x128xf32>
      %cst_18 = arith.constant dense<0.000000e+00> : vector<8x128xf32>
      %28 = tpu.matmul %18, %27, %cst_18 {dimension_numbers = #tpu.dot_dimension_numbers<[1], [0], [0], [1], [0, 0, 1, 1], [], []>} : vector<8x128xf32>, vector<128x128xf32>, vector<8x128xf32> -> vector<8x128xf32>
      %c2 = arith.constant 2 : index
      %c0_19 = arith.constant 0 : index
      %c0_20 = arith.constant 0 : index
      %29 = vector.load %arg6[%c2, %c0_19, %c0_20] : memref<3x128x128xf32, #tpu.memory_space<vmem>>, vector<1x128x128xf32>
      %30 = vector.shape_cast %29 : vector<1x128x128xf32> to vector<128x128xf32>
      %cst_21 = arith.constant dense<0.000000e+00> : vector<8x128xf32>
      %31 = tpu.matmul %18, %30, %cst_21 {dimension_numbers = #tpu.dot_dimension_numbers<[1], [0], [0], [1], [0, 0, 1, 1], [], []>} : vector<8x128xf32>, vector<128x128xf32>, vector<8x128xf32> -> vector<8x128xf32>
      %32 = vector.extract_strided_slice %22 {offsets = [0, 0, 0], sizes = [1, 8, 128], strides = [1, 1, 1]} : vector<3x8x128xf32> to vector<1x8x128xf32>
      %33 = vector.shape_cast %32 : vector<1x8x128xf32> to vector<8x128xf32>
      %34 = arith.addf %33, %25 : vector<8x128xf32>
      %35 = arith.negf %34 : vector<8x128xf32>
      %36 = math.exp %35 : vector<8x128xf32>
      %cst_22 = arith.constant 1.000000e+00 : f32
      %37 = vector.broadcast %cst_22 : f32 to vector<8x128xf32>
      %38 = arith.addf %37, %36 : vector<8x128xf32>
      %39 = arith.divf %37, %38 : vector<8x128xf32>
      %40 = vector.extract_strided_slice %22 {offsets = [1, 0, 0], sizes = [1, 8, 128], strides = [1, 1, 1]} : vector<3x8x128xf32> to vector<1x8x128xf32>
      %41 = vector.shape_cast %40 : vector<1x8x128xf32> to vector<8x128xf32>
      %42 = arith.addf %41, %28 : vector<8x128xf32>
      %43 = arith.negf %42 : vector<8x128xf32>
      %44 = math.exp %43 : vector<8x128xf32>
      %cst_23 = arith.constant 1.000000e+00 : f32
      %45 = vector.broadcast %cst_23 : f32 to vector<8x128xf32>
      %46 = arith.addf %45, %44 : vector<8x128xf32>
      %47 = arith.divf %45, %46 : vector<8x128xf32>
      %48 = vector.extract_strided_slice %22 {offsets = [2, 0, 0], sizes = [1, 8, 128], strides = [1, 1, 1]} : vector<3x8x128xf32> to vector<1x8x128xf32>
      %49 = vector.shape_cast %48 : vector<1x8x128xf32> to vector<8x128xf32>
      %50 = vector.broadcast %17 : vector<1x128xf32> to vector<8x128xf32>
      %51 = arith.addf %31, %50 : vector<8x128xf32>
      %52 = arith.mulf %39, %51 : vector<8x128xf32>
      %53 = arith.addf %49, %52 : vector<8x128xf32>
      %54 = math.tanh %53 : vector<8x128xf32>
      %cst_24 = arith.constant 1.000000e+00 : f32
      %55 = vector.broadcast %cst_24 : f32 to vector<8x128xf32>
      %56 = arith.subf %55, %47 : vector<8x128xf32>
      %57 = arith.mulf %56, %54 : vector<8x128xf32>
      %58 = arith.mulf %47, %18 : vector<8x128xf32>
      %59 = arith.addf %57, %58 : vector<8x128xf32>
      %60 = vector.broadcast %19 : i32 to vector<8x1xi32>
      %61 = arith.cmpi slt, %60, %16 : vector<8x1xi32>
      %62 = vector.shape_cast %61 : vector<8x1xi1> to vector<8x1xi1>
      %63 = vector.broadcast %62 : vector<8x1xi1> to vector<8x128xi1>
      %64 = arith.select %63, %59, %18 : vector<8x128xi1>, vector<8x128xf32>
      %cst_25 = arith.constant 0.000000e+00 : f32
      %65 = vector.shape_cast %61 : vector<8x1xi1> to vector<8x1xi1>
      %66 = vector.broadcast %65 : vector<8x1xi1> to vector<8x128xi1>
      %67 = vector.broadcast %cst_25 : f32 to vector<8x128xf32>
      %68 = arith.select %66, %64, %67 : vector<8x128xi1>, vector<8x128xf32>
      %69 = arith.index_cast %c0_i32_9 : i32 to index
      %c0_26 = arith.constant 0 : index
      %c0_27 = arith.constant 0 : index
      %70 = vector.load %arg8[%69, %c0_26, %c0_27] : memref<4x8x128xf32, #tpu.memory_space<vmem>>, vector<1x8x128xf32>
      %71 = vector.shape_cast %70 : vector<1x8x128xf32> to vector<8x128xf32>
      %72 = vector.shape_cast %68 : vector<8x128xf32> to vector<1x8x128xf32>
      tpu.vector_store %arg8[%69, %c0_26, %c0_27], %72 {strides = array<i32>} : memref<4x8x128xf32, #tpu.memory_space<vmem>>, vector<1x8x128xf32>,
      %c1_i32_28 = arith.constant 1 : i32
      %73 = arith.addi %3, %c1_i32_28 : i32
      %74 = arith.index_cast %c1_i32_28 : i32 to index
      %c0_29 = arith.constant 0 : index
      %c0_30 = arith.constant 0 : index
      %c0_31 = arith.constant 0 : index
      %75 = vector.load %arg3[%74, %c0_29, %c0_30, %c0_31] : memref<4x3x8x128xf32, #tpu.memory_space<vmem>>, vector<1x3x8x128xf32>
      %76 = vector.shape_cast %75 : vector<1x3x8x128xf32> to vector<3x8x128xf32>
      %c0_32 = arith.constant 0 : index
      %c0_33 = arith.constant 0 : index
      %c0_34 = arith.constant 0 : index
      %77 = vector.load %arg6[%c0_32, %c0_33, %c0_34] : memref<3x128x128xf32, #tpu.memory_space<vmem>>, vector<1x128x128xf32>
      %78 = vector.shape_cast %77 : vector<1x128x128xf32> to vector<128x128xf32>
      %cst_35 = arith.constant dense<0.000000e+00> : vector<8x128xf32>
      %79 = tpu.matmul %64, %78, %cst_35 {dimension_numbers = #tpu.dot_dimension_numbers<[1], [0], [0], [1], [0, 0, 1, 1], [], []>} : vector<8x128xf32>, vector<128x128xf32>, vector<8x128xf32> -> vector<8x128xf32>
      %c1_36 = arith.constant 1 : index
      %c0_37 = arith.constant 0 : index
      %c0_38 = arith.constant 0 : index
      %80 = vector.load %arg6[%c1_36, %c0_37, %c0_38] : memref<3x128x128xf32, #tpu.memory_space<vmem>>, vector<1x128x128xf32>
      %81 = vector.shape_cast %80 : vector<1x128x128xf32> to vector<128x128xf32>
      %cst_39 = arith.constant dense<0.000000e+00> : vector<8x128xf32>
      %82 = tpu.matmul %64, %81, %cst_39 {dimension_numbers = #tpu.dot_dimension_numbers<[1], [0], [0], [1], [0, 0, 1, 1], [], []>} : vector<8x128xf32>, vector<128x128xf32>, vector<8x128xf32> -> vector<8x128xf32>
      %c2_40 = arith.constant 2 : index
      %c0_41 = arith.constant 0 : index
      %c0_42 = arith.constant 0 : index
      %83 = vector.load %arg6[%c2_40, %c0_41, %c0_42] : memref<3x128x128xf32, #tpu.memory_space<vmem>>, vector<1x128x128xf32>
      %84 = vector.shape_cast %83 : vector<1x128x128xf32> to vector<128x128xf32>
      %cst_43 = arith.constant dense<0.000000e+00> : vector<8x128xf32>
      %85 = tpu.matmul %64, %84, %cst_43 {dimension_numbers = #tpu.dot_dimension_numbers<[1], [0], [0], [1], [0, 0, 1, 1], [], []>} : vector<8x128xf32>, vector<128x128xf32>, vector<8x128xf32> -> vector<8x128xf32>
      %86 = vector.extract_strided_slice %76 {offsets = [0, 0, 0], sizes = [1, 8, 128], strides = [1, 1, 1]} : vector<3x8x128xf32> to vector<1x8x128xf32>
      %87 = vector.shape_cast %86 : vector<1x8x128xf32> to vector<8x128xf32>
      %88 = arith.addf %87, %79 : vector<8x128xf32>
      %89 = arith.negf %88 : vector<8x128xf32>
      %90 = math.exp %89 : vector<8x128xf32>
      %cst_44 = arith.constant 1.000000e+00 : f32
      %91 = vector.broadcast %cst_44 : f32 to vector<8x128xf32>
      %92 = arith.addf %91, %90 : vector<8x128xf32>
      %93 = arith.divf %91, %92 : vector<8x128xf32>
      %94 = vector.extract_strided_slice %76 {offsets = [1, 0, 0], sizes = [1, 8, 128], strides = [1, 1, 1]} : vector<3x8x128xf32> to vector<1x8x128xf32>
      %95 = vector.shape_cast %94 : vector<1x8x128xf32> to vector<8x128xf32>
      %96 = arith.addf %95, %82 : vector<8x128xf32>
      %97 = arith.negf %96 : vector<8x128xf32>
      %98 = math.exp %97 : vector<8x128xf32>
      %cst_45 = arith.constant 1.000000e+00 : f32
      %99 = vector.broadcast %cst_45 : f32 to vector<8x128xf32>
      %100 = arith.addf %99, %98 : vector<8x128xf32>
      %101 = arith.divf %99, %100 : vector<8x128xf32>
      %102 = vector.extract_strided_slice %76 {offsets = [2, 0, 0], sizes = [1, 8, 128], strides = [1, 1, 1]} : vector<3x8x128xf32> to vector<1x8x128xf32>
      %103 = vector.shape_cast %102 : vector<1x8x128xf32> to vector<8x128xf32>
      %104 = vector.broadcast %17 : vector<1x128xf32> to vector<8x128xf32>
      %105 = arith.addf %85, %104 : vector<8x128xf32>
      %106 = arith.mulf %93, %105 : vector<8x128xf32>
      %107 = arith.addf %103, %106 : vector<8x128xf32>
      %108 = math.tanh %107 : vector<8x128xf32>
      %cst_46 = arith.constant 1.000000e+00 : f32
      %109 = vector.broadcast %cst_46 : f32 to vector<8x128xf32>
      %110 = arith.subf %109, %101 : vector<8x128xf32>
      %111 = arith.mulf %110, %108 : vector<8x128xf32>
      %112 = arith.mulf %101, %64 : vector<8x128xf32>
      %113 = arith.addf %111, %112 : vector<8x128xf32>
      %114 = vector.broadcast %73 : i32 to vector<8x1xi32>
      %115 = arith.cmpi slt, %114, %16 : vector<8x1xi32>
      %116 = vector.shape_cast %115 : vector<8x1xi1> to vector<8x1xi1>
      %117 = vector.broadcast %116 : vector<8x1xi1> to vector<8x128xi1>
      %118 = arith.select %117, %113, %64 : vector<8x128xi1>, vector<8x128xf32>
      %cst_47 = arith.constant 0.000000e+00 : f32
      %119 = vector.shape_cast %115 : vector<8x1xi1> to vector<8x1xi1>
      %120 = vector.broadcast %119 : vector<8x1xi1> to vector<8x128xi1>
      %121 = vector.broadcast %cst_47 : f32 to vector<8x128xf32>
      %122 = arith.select %120, %118, %121 : vector<8x128xi1>, vector<8x128xf32>
      %123 = arith.index_cast %c1_i32_28 : i32 to index
      %c0_48 = arith.constant 0 : index
      %c0_49 = arith.constant 0 : index
      %124 = vector.load %arg8[%123, %c0_48, %c0_49] : memref<4x8x128xf32, #tpu.memory_space<vmem>>, vector<1x8x128xf32>
      %125 = vector.shape_cast %124 : vector<1x8x128xf32> to vector<8x128xf32>
      %126 = vector.shape_cast %122 : vector<8x128xf32> to vector<1x8x128xf32>
      tpu.vector_store %arg8[%123, %c0_48, %c0_49], %126 {strides = array<i32>} : memref<4x8x128xf32, #tpu.memory_space<vmem>>, vector<1x8x128xf32>,
      %c2_i32 = arith.constant 2 : i32
      %127 = arith.addi %3, %c2_i32 : i32
      %128 = arith.index_cast %c2_i32 : i32 to index
      %c0_50 = arith.constant 0 : index
      %c0_51 = arith.constant 0 : index
      %c0_52 = arith.constant 0 : index
      %129 = vector.load %arg3[%128, %c0_50, %c0_51, %c0_52] : memref<4x3x8x128xf32, #tpu.memory_space<vmem>>, vector<1x3x8x128xf32>
      %130 = vector.shape_cast %129 : vector<1x3x8x128xf32> to vector<3x8x128xf32>
      %c0_53 = arith.constant 0 : index
      %c0_54 = arith.constant 0 : index
      %c0_55 = arith.constant 0 : index
      %131 = vector.load %arg6[%c0_53, %c0_54, %c0_55] : memref<3x128x128xf32, #tpu.memory_space<vmem>>, vector<1x128x128xf32>
      %132 = vector.shape_cast %131 : vector<1x128x128xf32> to vector<128x128xf32>
      %cst_56 = arith.constant dense<0.000000e+00> : vector<8x128xf32>
      %133 = tpu.matmul %118, %132, %cst_56 {dimension_numbers = #tpu.dot_dimension_numbers<[1], [0], [0], [1], [0, 0, 1, 1], [], []>} : vector<8x128xf32>, vector<128x128xf32>, vector<8x128xf32> -> vector<8x128xf32>
      %c1_57 = arith.constant 1 : index
      %c0_58 = arith.constant 0 : index
      %c0_59 = arith.constant 0 : index
      %134 = vector.load %arg6[%c1_57, %c0_58, %c0_59] : memref<3x128x128xf32, #tpu.memory_space<vmem>>, vector<1x128x128xf32>
      %135 = vector.shape_cast %134 : vector<1x128x128xf32> to vector<128x128xf32>
      %cst_60 = arith.constant dense<0.000000e+00> : vector<8x128xf32>
      %136 = tpu.matmul %118, %135, %cst_60 {dimension_numbers = #tpu.dot_dimension_numbers<[1], [0], [0], [1], [0, 0, 1, 1], [], []>} : vector<8x128xf32>, vector<128x128xf32>, vector<8x128xf32> -> vector<8x128xf32>
      %c2_61 = arith.constant 2 : index
      %c0_62 = arith.constant 0 : index
      %c0_63 = arith.constant 0 : index
      %137 = vector.load %arg6[%c2_61, %c0_62, %c0_63] : memref<3x128x128xf32, #tpu.memory_space<vmem>>, vector<1x128x128xf32>
      %138 = vector.shape_cast %137 : vector<1x128x128xf32> to vector<128x128xf32>
      %cst_64 = arith.constant dense<0.000000e+00> : vector<8x128xf32>
      %139 = tpu.matmul %118, %138, %cst_64 {dimension_numbers = #tpu.dot_dimension_numbers<[1], [0], [0], [1], [0, 0, 1, 1], [], []>} : vector<8x128xf32>, vector<128x128xf32>, vector<8x128xf32> -> vector<8x128xf32>
      %140 = vector.extract_strided_slice %130 {offsets = [0, 0, 0], sizes = [1, 8, 128], strides = [1, 1, 1]} : vector<3x8x128xf32> to vector<1x8x128xf32>
      %141 = vector.shape_cast %140 : vector<1x8x128xf32> to vector<8x128xf32>
      %142 = arith.addf %141, %133 : vector<8x128xf32>
      %143 = arith.negf %142 : vector<8x128xf32>
      %144 = math.exp %143 : vector<8x128xf32>
      %cst_65 = arith.constant 1.000000e+00 : f32
      %145 = vector.broadcast %cst_65 : f32 to vector<8x128xf32>
      %146 = arith.addf %145, %144 : vector<8x128xf32>
      %147 = arith.divf %145, %146 : vector<8x128xf32>
      %148 = vector.extract_strided_slice %130 {offsets = [1, 0, 0], sizes = [1, 8, 128], strides = [1, 1, 1]} : vector<3x8x128xf32> to vector<1x8x128xf32>
      %149 = vector.shape_cast %148 : vector<1x8x128xf32> to vector<8x128xf32>
      %150 = arith.addf %149, %136 : vector<8x128xf32>
      %151 = arith.negf %150 : vector<8x128xf32>
      %152 = math.exp %151 : vector<8x128xf32>
      %cst_66 = arith.constant 1.000000e+00 : f32
      %153 = vector.broadcast %cst_66 : f32 to vector<8x128xf32>
      %154 = arith.addf %153, %152 : vector<8x128xf32>
      %155 = arith.divf %153, %154 : vector<8x128xf32>
      %156 = vector.extract_strided_slice %130 {offsets = [2, 0, 0], sizes = [1, 8, 128], strides = [1, 1, 1]} : vector<3x8x128xf32> to vector<1x8x128xf32>
      %157 = vector.shape_cast %156 : vector<1x8x128xf32> to vector<8x128xf32>
      %158 = vector.broadcast %17 : vector<1x128xf32> to vector<8x128xf32>
      %159 = arith.addf %139, %158 : vector<8x128xf32>
      %160 = arith.mulf %147, %159 : vector<8x128xf32>
      %161 = arith.addf %157, %160 : vector<8x128xf32>
      %162 = math.tanh %161 : vector<8x128xf32>
      %cst_67 = arith.constant 1.000000e+00 : f32
      %163 = vector.broadcast %cst_67 : f32 to vector<8x128xf32>
      %164 = arith.subf %163, %155 : vector<8x128xf32>
      %165 = arith.mulf %164, %162 : vector<8x128xf32>
      %166 = arith.mulf %155, %118 : vector<8x128xf32>
      %167 = arith.addf %165, %166 : vector<8x128xf32>
      %168 = vector.broadcast %127 : i32 to vector<8x1xi32>
      %169 = arith.cmpi slt, %168, %16 : vector<8x1xi32>
      %170 = vector.shape_cast %169 : vector<8x1xi1> to vector<8x1xi1>
      %171 = vector.broadcast %170 : vector<8x1xi1> to vector<8x128xi1>
      %172 = arith.select %171, %167, %118 : vector<8x128xi1>, vector<8x128xf32>
      %cst_68 = arith.constant 0.000000e+00 : f32
      %173 = vector.shape_cast %169 : vector<8x1xi1> to vector<8x1xi1>
      %174 = vector.broadcast %173 : vector<8x1xi1> to vector<8x128xi1>
      %175 = vector.broadcast %cst_68 : f32 to vector<8x128xf32>
      %176 = arith.select %174, %172, %175 : vector<8x128xi1>, vector<8x128xf32>
      %177 = arith.index_cast %c2_i32 : i32 to index
      %c0_69 = arith.constant 0 : index
      %c0_70 = arith.constant 0 : index
      %178 = vector.load %arg8[%177, %c0_69, %c0_70] : memref<4x8x128xf32, #tpu.memory_space<vmem>>, vector<1x8x128xf32>
      %179 = vector.shape_cast %178 : vector<1x8x128xf32> to vector<8x128xf32>
      %180 = vector.shape_cast %176 : vector<8x128xf32> to vector<1x8x128xf32>
      tpu.vector_store %arg8[%177, %c0_69, %c0_70], %180 {strides = array<i32>} : memref<4x8x128xf32, #tpu.memory_space<vmem>>, vector<1x8x128xf32>,
      %c3_i32 = arith.constant 3 : i32
      %181 = arith.addi %3, %c3_i32 : i32
      %182 = arith.index_cast %c3_i32 : i32 to index
      %c0_71 = arith.constant 0 : index
      %c0_72 = arith.constant 0 : index
      %c0_73 = arith.constant 0 : index
      %183 = vector.load %arg3[%182, %c0_71, %c0_72, %c0_73] : memref<4x3x8x128xf32, #tpu.memory_space<vmem>>, vector<1x3x8x128xf32>
      %184 = vector.shape_cast %183 : vector<1x3x8x128xf32> to vector<3x8x128xf32>
      %c0_74 = arith.constant 0 : index
      %c0_75 = arith.constant 0 : index
      %c0_76 = arith.constant 0 : index
      %185 = vector.load %arg6[%c0_74, %c0_75, %c0_76] : memref<3x128x128xf32, #tpu.memory_space<vmem>>, vector<1x128x128xf32>
      %186 = vector.shape_cast %185 : vector<1x128x128xf32> to vector<128x128xf32>
      %cst_77 = arith.constant dense<0.000000e+00> : vector<8x128xf32>
      %187 = tpu.matmul %172, %186, %cst_77 {dimension_numbers = #tpu.dot_dimension_numbers<[1], [0], [0], [1], [0, 0, 1, 1], [], []>} : vector<8x128xf32>, vector<128x128xf32>, vector<8x128xf32> -> vector<8x128xf32>
      %c1_78 = arith.constant 1 : index
      %c0_79 = arith.constant 0 : index
      %c0_80 = arith.constant 0 : index
      %188 = vector.load %arg6[%c1_78, %c0_79, %c0_80] : memref<3x128x128xf32, #tpu.memory_space<vmem>>, vector<1x128x128xf32>
      %189 = vector.shape_cast %188 : vector<1x128x128xf32> to vector<128x128xf32>
      %cst_81 = arith.constant dense<0.000000e+00> : vector<8x128xf32>
      %190 = tpu.matmul %172, %189, %cst_81 {dimension_numbers = #tpu.dot_dimension_numbers<[1], [0], [0], [1], [0, 0, 1, 1], [], []>} : vector<8x128xf32>, vector<128x128xf32>, vector<8x128xf32> -> vector<8x128xf32>
      %c2_82 = arith.constant 2 : index
      %c0_83 = arith.constant 0 : index
      %c0_84 = arith.constant 0 : index
      %191 = vector.load %arg6[%c2_82, %c0_83, %c0_84] : memref<3x128x128xf32, #tpu.memory_space<vmem>>, vector<1x128x128xf32>
      %192 = vector.shape_cast %191 : vector<1x128x128xf32> to vector<128x128xf32>
      %cst_85 = arith.constant dense<0.000000e+00> : vector<8x128xf32>
      %193 = tpu.matmul %172, %192, %cst_85 {dimension_numbers = #tpu.dot_dimension_numbers<[1], [0], [0], [1], [0, 0, 1, 1], [], []>} : vector<8x128xf32>, vector<128x128xf32>, vector<8x128xf32> -> vector<8x128xf32>
      %194 = vector.extract_strided_slice %184 {offsets = [0, 0, 0], sizes = [1, 8, 128], strides = [1, 1, 1]} : vector<3x8x128xf32> to vector<1x8x128xf32>
      %195 = vector.shape_cast %194 : vector<1x8x128xf32> to vector<8x128xf32>
      %196 = arith.addf %195, %187 : vector<8x128xf32>
      %197 = arith.negf %196 : vector<8x128xf32>
      %198 = math.exp %197 : vector<8x128xf32>
      %cst_86 = arith.constant 1.000000e+00 : f32
      %199 = vector.broadcast %cst_86 : f32 to vector<8x128xf32>
      %200 = arith.addf %199, %198 : vector<8x128xf32>
      %201 = arith.divf %199, %200 : vector<8x128xf32>
      %202 = vector.extract_strided_slice %184 {offsets = [1, 0, 0], sizes = [1, 8, 128], strides = [1, 1, 1]} : vector<3x8x128xf32> to vector<1x8x128xf32>
      %203 = vector.shape_cast %202 : vector<1x8x128xf32> to vector<8x128xf32>
      %204 = arith.addf %203, %190 : vector<8x128xf32>
      %205 = arith.negf %204 : vector<8x128xf32>
      %206 = math.exp %205 : vector<8x128xf32>
      %cst_87 = arith.constant 1.000000e+00 : f32
      %207 = vector.broadcast %cst_87 : f32 to vector<8x128xf32>
      %208 = arith.addf %207, %206 : vector<8x128xf32>
      %209 = arith.divf %207, %208 : vector<8x128xf32>
      %210 = vector.extract_strided_slice %184 {offsets = [2, 0, 0], sizes = [1, 8, 128], strides = [1, 1, 1]} : vector<3x8x128xf32> to vector<1x8x128xf32>
      %211 = vector.shape_cast %210 : vector<1x8x128xf32> to vector<8x128xf32>
      %212 = vector.broadcast %17 : vector<1x128xf32> to vector<8x128xf32>
      %213 = arith.addf %193, %212 : vector<8x128xf32>
      %214 = arith.mulf %201, %213 : vector<8x128xf32>
      %215 = arith.addf %211, %214 : vector<8x128xf32>
      %216 = math.tanh %215 : vector<8x128xf32>
      %cst_88 = arith.constant 1.000000e+00 : f32
      %217 = vector.broadcast %cst_88 : f32 to vector<8x128xf32>
      %218 = arith.subf %217, %209 : vector<8x128xf32>
      %219 = arith.mulf %218, %216 : vector<8x128xf32>
      %220 = arith.mulf %209, %172 : vector<8x128xf32>
      %221 = arith.addf %219, %220 : vector<8x128xf32>
      %222 = vector.broadcast %181 : i32 to vector<8x1xi32>
      %223 = arith.cmpi slt, %222, %16 : vector<8x1xi32>
      %224 = vector.shape_cast %223 : vector<8x1xi1> to vector<8x1xi1>
      %225 = vector.broadcast %224 : vector<8x1xi1> to vector<8x128xi1>
      %226 = arith.select %225, %221, %172 : vector<8x128xi1>, vector<8x128xf32>
      %cst_89 = arith.constant 0.000000e+00 : f32
      %227 = vector.shape_cast %223 : vector<8x1xi1> to vector<8x1xi1>
      %228 = vector.broadcast %227 : vector<8x1xi1> to vector<8x128xi1>
      %229 = vector.broadcast %cst_89 : f32 to vector<8x128xf32>
      %230 = arith.select %228, %226, %229 : vector<8x128xi1>, vector<8x128xf32>
      %231 = arith.index_cast %c3_i32 : i32 to index
      %c0_90 = arith.constant 0 : index
      %c0_91 = arith.constant 0 : index
      %232 = vector.load %arg8[%231, %c0_90, %c0_91] : memref<4x8x128xf32, #tpu.memory_space<vmem>>, vector<1x8x128xf32>
      %233 = vector.shape_cast %232 : vector<1x8x128xf32> to vector<8x128xf32>
      %234 = vector.shape_cast %230 : vector<8x128xf32> to vector<1x8x128xf32>
      tpu.vector_store %arg8[%231, %c0_90, %c0_91], %234 {strides = array<i32>} : memref<4x8x128xf32, #tpu.memory_space<vmem>>, vector<1x8x128xf32>,
      %c4_i32_92 = arith.constant 4 : i32
      %c0_93 = arith.constant 0 : index
      %c0_94 = arith.constant 0 : index
      %235 = vector.load %arg10[%c0_93, %c0_94] : memref<8x128xf32, #tpu.memory_space<vmem>>, vector<8x128xf32>
      tpu.vector_store %arg10[%c0_93, %c0_94], %226 {strides = array<i32>} : memref<8x128xf32, #tpu.memory_space<vmem>>, vector<8x128xf32>,
    } else {
    }
    %10 = arith.cmpi sge, %3, %6 : i32
    %11 = arith.extui %10 : i1 to i32
    %c0_i32_2 = arith.constant 0 : i32
    %12 = arith.cmpi ne, %11, %c0_i32_2 : i32
    scf.if %12 {
      %cst = arith.constant 0.000000e+00 : f32
      %16 = vector.broadcast %cst : f32 to vector<4x8x128xf32>
      %c0 = arith.constant 0 : index
      %c0_4 = arith.constant 0 : index
      %c0_5 = arith.constant 0 : index
      %17 = vector.load %arg8[%c0, %c0_4, %c0_5] : memref<4x8x128xf32, #tpu.memory_space<vmem>>, vector<4x8x128xf32>
      tpu.vector_store %arg8[%c0, %c0_4, %c0_5], %16 {strides = array<i32>} : memref<4x8x128xf32, #tpu.memory_space<vmem>>, vector<4x8x128xf32>,
    } else {
    }
    %c1_i32 = arith.constant 1 : i32
    %13 = arith.cmpi eq, %arg1, %c1_i32 : i32
    %14 = arith.extui %13 : i1 to i32
    %c0_i32_3 = arith.constant 0 : i32
    %15 = arith.cmpi ne, %14, %c0_i32_3 : i32
    scf.if %15 {
      %c0 = arith.constant 0 : index
      %c0_4 = arith.constant 0 : index
      %16 = vector.load %arg10[%c0, %c0_4] : memref<8x128xf32, #tpu.memory_space<vmem>>, vector<8x128xf32>
      %c0_5 = arith.constant 0 : index
      %c0_6 = arith.constant 0 : index
      %c0_7 = arith.constant 0 : index
      %17 = vector.load %arg9[%c0_5, %c0_6, %c0_7] : memref<1x8x128xf32, #tpu.memory_space<vmem>>, vector<1x8x128xf32>
      %18 = vector.shape_cast %17 : vector<1x8x128xf32> to vector<8x128xf32>
      %19 = vector.shape_cast %16 : vector<8x128xf32> to vector<1x8x128xf32>
      tpu.vector_store %arg9[%c0_5, %c0_6, %c0_7], %19 {strides = array<i32>} : memref<1x8x128xf32, #tpu.memory_space<vmem>>, vector<1x8x128xf32>,
    } else {
    }
    return
  }
  func.func @transform_0(%arg0: i32, %arg1: i32, %arg2: memref<8xi32, #tpu.memory_space<smem>>) -> (i32, i32, i32, i32) {
    %c0_i32 = arith.constant 0 : i32
    %c0_i32_0 = arith.constant 0 : i32
    %c0_i32_1 = arith.constant 0 : i32
    return %arg1, %c0_i32, %arg0, %c0_i32_0 : i32, i32, i32, i32
  }
  func.func @transform_1(%arg0: i32, %arg1: i32, %arg2: memref<8xi32, #tpu.memory_space<smem>>) -> (i32, i32, i32) {
    %c0_i32 = arith.constant 0 : i32
    %c0_i32_0 = arith.constant 0 : i32
    %c0_i32_1 = arith.constant 0 : i32
    return %c0_i32, %arg0, %c0_i32_0 : i32, i32, i32
  }
  func.func @transform_2(%arg0: i32, %arg1: i32, %arg2: memref<8xi32, #tpu.memory_space<smem>>) -> (i32, i32) {
    %c0_i32 = arith.constant 0 : i32
    %c0_i32_0 = arith.constant 0 : i32
    return %arg0, %c0_i32 : i32, i32
  }
  func.func @transform_3(%arg0: i32, %arg1: i32, %arg2: memref<8xi32, #tpu.memory_space<smem>>) -> (i32, i32, i32) {
    %c0_i32 = arith.constant 0 : i32
    %c0_i32_0 = arith.constant 0 : i32
    %c0_i32_1 = arith.constant 0 : i32
    %c0_i32_2 = arith.constant 0 : i32
    return %c0_i32, %c0_i32_0, %c0_i32_1 : i32, i32, i32
  }
  func.func @transform_4(%arg0: i32, %arg1: i32, %arg2: memref<8xi32, #tpu.memory_space<smem>>) -> (i32, i32) {
    %c0_i32 = arith.constant 0 : i32
    %c0_i32_0 = arith.constant 0 : i32
    %c0_i32_1 = arith.constant 0 : i32
    return %c0_i32, %c0_i32_0 : i32, i32
  }
  func.func @transform_5(%arg0: i32, %arg1: i32, %arg2: memref<8xi32, #tpu.memory_space<smem>>) -> (i32, i32, i32) {
    %c0_i32 = arith.constant 0 : i32
    %c0_i32_0 = arith.constant 0 : i32
    return %arg1, %arg0, %c0_i32 : i32, i32, i32
  }
  func.func @transform_6(%arg0: i32, %arg1: i32, %arg2: memref<8xi32, #tpu.memory_space<smem>>) -> (i32, i32, i32) {
    %c0_i32 = arith.constant 0 : i32
    %c0_i32_0 = arith.constant 0 : i32
    %c0_i32_1 = arith.constant 0 : i32
    return %c0_i32, %arg0, %c0_i32_0 : i32, i32, i32
  }
}

</mosaic_0001>

<bundles_post_ra>
// kernel: encoder_gru_forward.1
= control target key start
LH: loop header
LB: loop body
LE: loop exit
PB: predicated region body
PF: predicated region fallthrough
CT: control target
= control target key end

     0   :  { %s3486_s0 = inlined_call_operand.vmem [shape: s32[8], index: 0, kind: input, shape index: {}]   ;;  %s3487_s1 = inlined_call_operand.vmem [shape: f32[8,3,8,128], index: 1, kind: input, shape index: {}]   ;;  %s3488_s2 = inlined_call_operand.vmem [shape: f32[1,8,128], index: 2, kind: input, shape index: {}]   ;;  %s3489_s3 = inlined_call_operand.vmem [shape: s32[8,1], index: 3, kind: input, shape index: {}]   ;;  %s3490_s4 = inlined_call_operand.vmem [shape: f32[3,128,128], index: 4, kind: input, shape index: {}]   ;;  %s3491_s5 = inlined_call_operand.vmem [shape: f32[1,128], index: 5, kind: input, shape index: {}]   ;;  %s3492_s6 = inlined_call_operand.vmem [shape: f32[8,8,128], index: 6, kind: output, shape index: {0}]   ;;  %s3493_s7 = inlined_call_operand.vmem [shape: f32[1,8,128], index: 7, kind: output, shape index: {1}]  }
   0x1   :  { %s13_s26 = sshll.u32 %s3486_s0, 4  ;;  %s14_s26 = int_to_ptr.vmem [resolvable:$true] %s13_s26 }
   0x2   :  { %s2849_s27 = scalar_lea.vmem %s14_s26, 16  ;;  %p2854_p1 = scmp.lt.s32.totalorder %s14_s26, %s14_s26 }
   0x3   :  { %p2850_p0 = scmp.ne.s32.totalorder %s14_s26, %s2849_s27  ;;  %p2855_p2 = scmp.lt.s32.totalorder %s2849_s27, %s2849_s27 }
   0x5   :  { %p2856_p3 = por %p2855_p2, %p2854_p1 }
   0x7   :  { %p2857_p4 = pnand %p2856_p3, %p2850_p0 }
   0x9   :  { %2860 = shalt.err (!%p2857_p4)  }
   0xa   :  { %s2887_s28 = smov [#allocation4]  }
   0xb   :  { %16 = dma.vmem_to_smem %s14_s26, 16, %s2887_s28, [#allocation3] }
   0xc   :  { %2873 = dma.done.wait [#allocation3], 16 }
   0xd   :  { %2874 = vsyncadd [#allocation3], 4294967280 }
   0xe   :  { %18 = sfence }
   0xf   :  { %s2936_s29 = smov 0   ;;  %s2938_s30 = smov 0  }
  0x10   :  { %s2940_s8 = smov 0  }
  0x11 LB: > { %s33_s0 = sadd.s32 1, %s2881_s30  ;;  %p1702_p5 = scmp.ge.s32.totalorder %s2885_s8, 1  ;;  %s2885_s8 = sphi %s2940_s8, %s24_s8   ;;  %s2881_s30 = sphi %s2938_s30, %s3495_s30   ;;  %s2877_s29 = sphi %s2936_s29, %s3494_s29  }
  0x12   : > { %p34_p6 = scmp.ge.s32.totalorder %s33_s0, 2  ;;  %p261_p7 = scmp.lt.s32.totalorder %s2885_s8, 3 }
  0x14   : > { %s3497_s0 = smov (%p34_p6, %s33_s0), 0  ;;  %p262_p8 = pnand %p1702_p5, %p261_p7 }
  0x15   : > { %s2957_s9 = sshll.u32 (!%p262_p8), %s2877_s29, 2  ;;  %p1707_p10 = scmp.ne.s32.totalorder (!%p262_p8), %s2877_s29, 0 }
  0x16   : > { %265 = sbr.rel (%p262_p8) target bundleno = 1161 (0x489), region = 40  ;;  %p311_p9 = scmp.lt.s32.totalorder (!%p262_p8), %s2957_s9, 7 }
  0x1d   : > { %s312_s10 = scalar_select %p311_p9, %s2957_s9, 7 }
  0x1e   : > { %344 = sbr.rel (%p1707_p10) target bundleno = 37 (0x25), region = 44  ;;  %v345_v0 = vld [vmem:[%s3488_s2] sm:$0xff] (!%p1707_p10) }
  0x1f   : > { %s2776_s11 = smul.u32 24, %s312_s10  ;;  %s1706_s12 = sshll.u32 %s312_s10, 3  ;;  %346 = vst [vmem:[#allocation2] sm:$0xff] (!%p1707_p10), %v345_v0 }
  0x20   : > { %s2964_s15 = scalar_lea.vmem %s3492_s6, %s1706_s12 }
  0x21   : > { %s2969_s18 = scalar_lea.vmem %s3487_s1, %s2776_s11 }
  0x25 PF: > { %s2975_s21 = sld [smem:[#allocation4]] }
  0x2b   : > { %p1709_p11 = scmp.ge.s32.totalorder %s2957_s9, %s2975_s21 }
  0x2c   : > { %v360_v1 = vld [vmem:[%s3490_s4] sm:$0xff] (!%p1709_p11)  ;;  %v361_v2 = vld [vmem:[%s3490_s4 + $0x8] sm:$0xff] (!%p1709_p11)  ;;  %v362_v3 = vld [vmem:[%s3490_s4 + $0x10] sm:$0xff] (!%p1709_p11)  ;;  %v2888_v4 = vmov (!%p1709_p11), 0.0|0.0   ;;  %vm2889_vm0 = vmmov (!%p1709_p11), 0   ;;  %v2890_v7 = vmov (!%p1709_p11), 0.0   ;;  %v647_v30 = vstv (!%p1709_p11), %s2957_s9 }
  0x2d   : > { %353 = sbr.rel (%p1709_p11) target bundleno = 1143 (0x477), region = 48  ;;  %2488 = vmatprep.subr.bf16.mxu0 (!%p1709_p11), %v2888_v4  ;;  %v2989_v5 = vpack.c.bf16 (!%p1709_p11), %v361_v2, %v360_v1  ;;  %v363_v6 = vld [vmem:[%s3490_s4 + $0x18] sm:$0xff] (!%p1709_p11)  ;;  %2512 = vmatprep.subr.bf16.mxu1 (!%p1709_p11), %v2888_v4  ;;  %v1710_v9 = vld [vmem:[%s3490_s4 + $0x80] sm:$0xff] (!%p1709_p11)  ;;  %v1711_v10 = vld [vmem:[%s3490_s4 + $0x88] sm:$0xff] (!%p1709_p11)  ;;  %v2891_v11 = vmov (!%p1709_p11), 0   ;;  %s657_s26 = sadd.s32 (!%p1709_p11), 1, %s2957_s9 }
  0x2e   : > { %2100 = vmatprep.mubr.msk.f32.mxu0 (!%p1709_p11), %vm2889_vm0, %v2890_v7  ;;  %2135 = vmatprep.mubr.msk.f32.mxu1 (!%p1709_p11), %vm2889_vm0, %v2890_v7  ;;  %v3000_v8 = vpack.c.bf16 (!%p1709_p11), %v363_v6, %v362_v3  ;;  %v364_v12 = vld [vmem:[%s3490_s4 + $0x20] sm:$0xff] (!%p1709_p11)  ;;  %v365_v13 = vld [vmem:[%s3490_s4 + $0x28] sm:$0xff] (!%p1709_p11)  ;;  %v3016_v14 = vpack.c.bf16 (!%p1709_p11), %v1711_v10, %v1710_v9  ;;  %v1712_v15 = vld [vmem:[%s3490_s4 + $0x90] sm:$0xff] (!%p1709_p11)  ;;  %v941_v34 = vstv (!%p1709_p11), %s657_s26  ;;  %s952_s27 = sadd.s32 (!%p1709_p11), 2, %s2957_s9  ;;  %s1247_s28 = sadd.s32 (!%p1709_p11), 3, %s2957_s9 }
  0x2f   : > { %2490 = vmatpush3.bf16.msra.mxu0 (!%p1709_p11), %v2989_v5  ;;  %2807 = vset.pattern.permute.xlu0 (!%p1709_p11), %v2891_v11  ;;  %v1713_v16 = vld [vmem:[%s3490_s4 + $0x98] sm:$0xff] (!%p1709_p11)  ;;  %v3029_v18 = vpack.c.bf16 (!%p1709_p11), %v365_v13, %v364_v12  ;;  %v1714_v19 = vld [vmem:[%s3490_s4 + $0xa0] sm:$0xff] (!%p1709_p11)  ;;  %v1715_v20 = vld [vmem:[%s3490_s4 + $0xa8] sm:$0xff] (!%p1709_p11) }
  0x30   : > { %2491 = vmatprep.subr.bf16.mxu0 (!%p1709_p11), %v2888_v4  ;;  %2808 = vset.pattern.permute.xlu1 (!%p1709_p11), %v2891_v11  ;;  %v3026_v17 = vpack.c.bf16 (!%p1709_p11), %v1713_v16, %v1712_v15  ;;  %v366_v21 = vld [vmem:[%s3490_s4 + $0x30] sm:$0xff] (!%p1709_p11)  ;;  %v367_v22 = vld [vmem:[%s3490_s4 + $0x38] sm:$0xff] (!%p1709_p11)  ;;  %v3046_v23 = vpack.c.bf16 (!%p1709_p11), %v1715_v20, %v1714_v19  ;;  %v368_v27 = vld [vmem:[%s3490_s4 + $0x40] sm:$0xff] (!%p1709_p11) }
  0x31   : > { %2514 = vmatpush3.bf16.msra.mxu1 (!%p1709_p11), %v3016_v14  ;;  %v3049_v24 = vpack.c.bf16 (!%p1709_p11), %v367_v22, %v366_v21  ;;  %v1716_v25 = vld [vmem:[%s3490_s4 + $0xb0] sm:$0xff] (!%p1709_p11)  ;;  %v1717_v26 = vld [vmem:[%s3490_s4 + $0xb8] sm:$0xff] (!%p1709_p11)  ;;  %v369_v28 = vld [vmem:[%s3490_s4 + $0x48] sm:$0xff] (!%p1709_p11) }
  0x32   : > { %2515 = vmatprep.subr.bf16.mxu1 (!%p1709_p11), %v2888_v4  ;;  %v3067_v29 = vpack.c.bf16 (!%p1709_p11), %v1717_v26, %v1716_v25  ;;  %v3071_v31 = vpack.c.bf16 (!%p1709_p11), %v369_v28, %v368_v27  ;;  %v1718_v32 = vld [vmem:[%s3490_s4 + $0xc0] sm:$0xff] (!%p1709_p11)  ;;  %v1719_v33 = vld [vmem:[%s3490_s4 + $0xc8] sm:$0xff] (!%p1709_p11)  ;;  %v370_v35 = vld [vmem:[%s3490_s4 + $0x50] sm:$0xff] (!%p1709_p11) }
  0x33   : > { %2493 = vmatpush3.bf16.msra.mxu0 (!%p1709_p11), %v3000_v8  ;;  %v371_v36 = vld [vmem:[%s3490_s4 + $0x58] sm:$0xff] (!%p1709_p11)  ;;  %v3090_v37 = vld [vmem:[%s3489_s3] sm:$0xff] (!%p1709_p11)  ;;  %v3094_v38 = vpack.c.bf16 (!%p1709_p11), %v1719_v33, %v1718_v32  ;;  %v1720_v41 = vld [vmem:[%s3490_s4 + $0xd0] sm:$0xff] (!%p1709_p11) }
  0x34   : > { %2494 = vmatprep.subr.bf16.mxu0 %v2888_v4  ;;  %vm648_vm1 = vcmp.lt.s32.totalorder %v647_v30, %v3090_v37  ;;  %vm942_vm2 = vcmp.lt.s32.totalorder %v941_v34, %v3090_v37  ;;  %v3099_v40 = vpack.c.bf16 %v371_v36, %v370_v35  ;;  %v1721_v42 = vld [vmem:[%s3490_s4 + $0xd8] sm:$0xff]  ;;  %v372_v43 = vld [vmem:[%s3490_s4 + $0x60] sm:$0xff]  ;;  %v373_v44 = vld [vmem:[%s3490_s4 + $0x68] sm:$0xff] }
  0x35   : > { %2517 = vmatpush3.bf16.msra.mxu1 %v3026_v17  ;;  %v649_v39 = vsel %vm648_vm1, 1, %v2891_v11  ;;  %v943_v45 = vsel %vm942_vm2, 1, %v2891_v11  ;;  %v3117_v46 = vpack.c.bf16 %v1721_v42, %v1720_v41  ;;  %v3120_v47 = vpack.c.bf16 %v373_v44, %v372_v43  ;;  %v1722_v48 = vld [vmem:[%s3490_s4 + $0xe0] sm:$0xff]  ;;  %v1723_v49 = vld [vmem:[%s3490_s4 + $0xe8] sm:$0xff]  ;;  %v374_v50 = vld [vmem:[%s3490_s4 + $0x70] sm:$0xff] }
  0x36   : > { %2518 = vmatprep.subr.bf16.mxu1 %v2888_v4  ;;  %651 = vperm.xlu0 %2807, %v649_v39   ;;  %v375_v51 = vld [vmem:[%s3490_s4 + $0x78] sm:$0xff]  ;;  %v3137_v52 = vpack.c.bf16 %v1723_v49, %v1722_v48  ;;  %v1724_v54 = vld [vmem:[%s3490_s4 + $0xf0] sm:$0xff]  ;;  %v1726_v56 = vld [vmem:[%s3490_s4 + $0x100] sm:$0xff] }
  0x37   : > { %2496 = vmatpush3.bf16.msra.mxu0 %v3029_v18  ;;  %v3140_v53 = vpack.c.bf16 %v375_v51, %v374_v50  ;;  %v1725_v55 = vld [vmem:[%s3490_s4 + $0xf8] sm:$0xff]  ;;  %v1727_v57 = vld [vmem:[%s3490_s4 + $0x108] sm:$0xff]  ;;  %v3160_v59 = vld [vmem:[#allocation2] sm:$0xff] }
  0x38   : > { %2497 = vmatprep.subr.bf16.mxu0 %v2888_v4  ;;  %v3157_v58 = vpack.c.bf16 %v1725_v55, %v1724_v54  ;;  %v3162_v60 = vpack.c.bf16 %v1727_v57, %v1726_v56  ;;  %v1728_v61 = vld [vmem:[%s3490_s4 + $0x110] sm:$0xff]  ;;  %v1729_v62 = vld [vmem:[%s3490_s4 + $0x118] sm:$0xff]  ;;  %v1730_v0 = vld [vmem:[%s3490_s4 + $0x120] sm:$0xff] }
  0x39   : > { %2520 = vmatpush3.bf16.msra.mxu1 %v3046_v23  ;;  %v3175_v63 = vpack.c.bf16 %v1729_v62, %v1728_v61  ;;  %v1731_v1 = vld [vmem:[%s3490_s4 + $0x128] sm:$0xff]  ;;  %v1732_v3 = vld [vmem:[%s3490_s4 + $0x130] sm:$0xff]  ;;  %v1733_v6 = vld [vmem:[%s3490_s4 + $0x138] sm:$0xff] }
  0x3a   : > { %2521 = vmatprep.subr.bf16.mxu1 %v2888_v4  ;;  %945 = vperm.xlu0 %2807, %v943_v45   ;;  %v3192_v2 = vpack.c.bf16 %v1731_v1, %v1730_v0  ;;  %v3204_v9 = vpack.c.bf16 %v1733_v6, %v1732_v3  ;;  %v1734_v10 = vld [vmem:[%s3490_s4 + $0x140] sm:$0xff]  ;;  %v1735_v12 = vld [vmem:[%s3490_s4 + $0x148] sm:$0xff]  ;;  %v1736_v15 = vld [vmem:[%s3490_s4 + $0x150] sm:$0xff] }
  0x3b   : > { %2499 = vmatpush3.bf16.msra.mxu0 %v3049_v24  ;;  %v3216_v13 = vpack.c.bf16 %v1735_v12, %v1734_v10  ;;  %v1737_v16 = vld [vmem:[%s3490_s4 + $0x158] sm:$0xff]  ;;  %v1738_v20 = vld [vmem:[%s3490_s4 + $0x160] sm:$0xff]  ;;  %v1739_v21 = vld [vmem:[%s3490_s4 + $0x168] sm:$0xff] }
  0x3c   : > { %2500 = vmatprep.subr.bf16.mxu0 %v2888_v4  ;;  %v3228_v19 = vpack.c.bf16 %v1737_v16, %v1736_v15  ;;  %v3240_v22 = vpack.c.bf16 %v1739_v21, %v1738_v20  ;;  %v1740_v25 = vld [vmem:[%s3490_s4 + $0x170] sm:$0xff]  ;;  %v1741_v26 = vld [vmem:[%s3490_s4 + $0x178] sm:$0xff]  ;;  %v357_v28 = vld [vmem:[%s2969_s18] sm:$0xff] }
  0x3d   : > { %2523 = vmatpush3.bf16.msra.mxu1 %v3067_v29  ;;  %v3252_v27 = vpack.c.bf16 %v1741_v26, %v1740_v25  ;;  %v358_v39 = vld [vmem:[%s2969_s18 + $0x8] sm:$0xff]  ;;  %v3286_v49 = vld [vmem:[%s3491_s5] ss:$0 sm:$0xff]  ;;  %v359_v56 = vld [vmem:[%s2969_s18 + $0x10] sm:$0xff] }
  0x3e   : > { %2524 = vmatprep.subr.bf16.mxu1 %v2888_v4  ;;  %v1745_v25 = vld [vmem:[%s2969_s18 + $0x18] sm:$0xff] }
  0x3f   : > { %2502 = vmatpush3.bf16.msra.mxu0 %v3071_v31 }
  0x40   : > { %2503 = vmatprep.subr.bf16.mxu0 %v2888_v4 }
  0x41   : > { %2526 = vmatpush3.bf16.msra.mxu1 %v3094_v38 }
  0x42   : > { %2527 = vmatprep.subr.bf16.mxu1 %v2888_v4 }
  0x43   : > { %2505 = vmatpush3.bf16.msra.mxu0 %v3099_v40 }
  0x44   : > { %2506 = vmatprep.subr.bf16.mxu0 %v2888_v4 }
  0x45   : > { %2529 = vmatpush3.bf16.msra.mxu1 %v3117_v46 }
  0x46   : > { %2530 = vmatprep.subr.bf16.mxu1 %v2888_v4 }
  0x47   : > { %2508 = vmatpush3.bf16.msra.mxu0 %v3120_v47 }
  0x48   : > { %2509 = vmatprep.subr.bf16.mxu0 %v2888_v4 }
  0x49   : > { %2532 = vmatpush3.bf16.msra.mxu1 %v3137_v52 }
  0x4a   : > { %2533 = vmatprep.subr.bf16.mxu1 %v2888_v4 }
  0x4b   : > { %2511 = vmatpush3.bf16.msra.mxu0 %v3140_v53 }
  0x4c   : > { %2536 = vmatprep.subr.bf16.mxu0 %v2888_v4 }
  0x4d   : > { %2535 = vmatpush3.bf16.msra.mxu1 %v3157_v58 }
  0x4e   : > { %2101 = vmatmul.mubr.f32.vlgmr.msra.gmra.mrb[0].mxu0 %v3160_v59  ;;  %2560 = vmatprep.subr.bf16.mxu1 %v2888_v4 }
  0x4f   : > { %2538 = vmatpush3.bf16.msra.mxu0 %v3162_v60  ;;  %2170 = vmatprep.mubr.msk.f32.mxu0 %vm2889_vm0, %v2890_v7 }
  0x50   : > { %2539 = vmatprep.subr.bf16.mxu0 %v2888_v4  ;;  %2136 = vmatmul.mubr.f32.vlgmr.msra.gmra.mrb[0].mxu1 %v3160_v59 }
  0x51   : > { %2562 = vmatpush3.bf16.msra.mxu1 %v2989_v5  ;;  %2205 = vmatprep.mubr.msk.f32.mxu1 %vm2889_vm0, %v2890_v7 }
  0x52   : > { %2563 = vmatprep.subr.bf16.mxu1 %v2888_v4 }
  0x53   : > { %2541 = vmatpush3.bf16.msra.mxu0 %v3175_v63 }
  0x54   : > { %2542 = vmatprep.subr.bf16.mxu0 %v2888_v4 }
  0x55   : > { %2565 = vmatpush3.bf16.msra.mxu1 %v3000_v8 }
  0x56   : > { %2566 = vmatprep.subr.bf16.mxu1 %v2888_v4 }
  0x57   : > { %2544 = vmatpush3.bf16.msra.mxu0 %v3192_v2 }
  0x58   : > { %2545 = vmatprep.subr.bf16.mxu0 %v2888_v4 }
  0x59   : > { %2568 = vmatpush3.bf16.msra.mxu1 %v3029_v18 }
  0x5a   : > { %2569 = vmatprep.subr.bf16.mxu1 %v2888_v4 }
  0x5b   : > { %2547 = vmatpush3.bf16.msra.mxu0 %v3204_v9 }
  0x5c   : > { %2548 = vmatprep.subr.bf16.mxu0 %v2888_v4 }
  0x5d   : > { %2571 = vmatpush3.bf16.msra.mxu1 %v3049_v24 }
  0x5e   : > { %2572 = vmatprep.subr.bf16.mxu1 %v2888_v4 }
  0x5f   : > { %2550 = vmatpush3.bf16.msra.mxu0 %v3216_v13 }
  0x60   : > { %2551 = vmatprep.subr.bf16.mxu0 %v2888_v4 }
  0x61   : > { %2574 = vmatpush3.bf16.msra.mxu1 %v3071_v31 }
  0x62   : > { %2575 = vmatprep.subr.bf16.mxu1 %v2888_v4 }
  0x63   : > { %2553 = vmatpush3.bf16.msra.mxu0 %v3228_v19 }
  0x64   : > { %2554 = vmatprep.subr.bf16.mxu0 %v2888_v4 }
  0x65   : > { %2577 = vmatpush3.bf16.msra.mxu1 %v3099_v40 }
  0x66   : > { %2578 = vmatprep.subr.bf16.mxu1 %v2888_v4 }
  0x67   : > { %2556 = vmatpush3.bf16.msra.mxu0 %v3240_v22 }
  0x68   : > { %2557 = vmatprep.subr.bf16.mxu0 %v2888_v4 }
  0x69   : > { %2580 = vmatpush3.bf16.msra.mxu1 %v3120_v47 }
  0x6a   : > { %2581 = vmatprep.subr.bf16.mxu1 %v2888_v4 }
  0x6b   : > { %2559 = vmatpush3.bf16.msra.mxu0 %v3252_v27 }
  0x6c   : > { %2584 = vmatprep.subr.bf16.mxu0 %v2888_v4 }
  0x6d   : > { %2583 = vmatpush3.bf16.msra.mxu1 %v3140_v53 }
  0x6e   : > { %2171 = vmatmul.mubr.f32.vlgmr.msra.gmra.mrb[2].mxu0 %v3160_v59  ;;  %2608 = vmatprep.subr.bf16.mxu1 %v2888_v4 }
  0x6f   : > { %2586 = vmatpush3.bf16.msra.mxu0 %v3016_v14  ;;  %2240 = vmatprep.mubr.msk.f32.mxu0 %vm2889_vm0, %v2890_v7 }
  0x70   : > { %2587 = vmatprep.subr.bf16.mxu0 %v2888_v4 }
  0x73   : > { %2589 = vmatpush3.bf16.msra.mxu0 %v3026_v17 }
  0x74   : > { %2590 = vmatprep.subr.bf16.mxu0 %v2888_v4 }
  0x77   : > { %2592 = vmatpush3.bf16.msra.mxu0 %v3046_v23 }
  0x78   : > { %2593 = vmatprep.subr.bf16.mxu0 %v2888_v4 }
  0x7b   : > { %2595 = vmatpush3.bf16.msra.mxu0 %v3067_v29 }
  0x7c   : > { %2596 = vmatprep.subr.bf16.mxu0 %v2888_v4 }
  0x7f   : > { %2598 = vmatpush3.bf16.msra.mxu0 %v3094_v38 }
  0x80   : > { %2599 = vmatprep.subr.bf16.mxu0 %v2888_v4 }
  0x83   : > { %2601 = vmatpush3.bf16.msra.mxu0 %v3117_v46 }
  0x84   : > { %2602 = vmatprep.subr.bf16.mxu0 %v2888_v4 }
  0x87   : > { %2604 = vmatpush3.bf16.msra.mxu0 %v3137_v52 }
  0x88   : > { %2605 = vmatprep.subr.bf16.mxu0 %v2888_v4 }
  0x8b   : > { %2607 = vmatpush3.bf16.msra.mxu0 %v3157_v58 }
  0x8c   : > { %2632 = vmatprep.subr.bf16.mxu0 %v2888_v4 }
  0xb5   : > { %v652_v10 = vpop.permute.xlu0 %651 }
  0xb6   : > { %vm653_vm3 = vcmp.eq.s32.totalorder %v652_v10, 1 }
 0x121   : > { %v442_v30 = vpop.f32.mrb[0].mxu0 }
 0x122   : > { %v550_v32 = vadd.f32 %v442_v30, %v357_v28  ;;  %v2102_v33 = vpop.f32.mrb[1].mxu0 }
 0x123   : > { %v529_v35 = vpop.f32.mrb[0].mxu1 }
 0x124   : > { %v1742_v34 = vmul.f32 -1.442695, %v550_v32  ;;  %v2137_v36 = vpop.f32.mrb[1].mxu1  ;;  %v557_v41 = vadd.f32 %v529_v35, %v358_v39  ;;  %v1746_v35 = vld [vmem:[%s2969_s18 + $0x20] sm:$0xff] }
 0x126   : > { %2809 = vpow2.f32 %v1742_v34  ;;  %v1743_v42 = vmul.f32 -1.442695, %v557_v41 }
 0x128   : > { %2811 = vpow2.f32 %v1743_v42 }
 0x130   : > { %v2810_v43 = vpop.eup %2809 }
 0x131   : > { %v554_v44 = vadd.f32 1.0, %v2810_v43 }
 0x132   : > { %v2812_v45 = vpop.eup %2811 }
 0x133   : > { %2813 = vrcp.f32 %v554_v44  ;;  %v561_v48 = vadd.f32 1.0, %v2812_v45 }
 0x135   : > { %2815 = vrcp.f32 %v561_v48 }
 0x13d   : > { %v2814_v55 = vpop.eup %2813 }
 0x13f   : > { %v2816_v62 = vpop.eup %2815 }
 0x140   : > { %v643_v0 = vsub.f32 1.0, %v2816_v62  ;;  %v645_v6 = vmul.f32 %v2816_v62, %v3160_v59 }
 0x141   : > { %v636_v50 = vpop.f32.mrb[2].mxu0 }
 0x142   : > { %v637_v51 = vadd.f32 %v3286_v49, %v636_v50  ;;  %v2172_v54 = vpop.f32.mrb[3].mxu0  ;;  %v1747_v50 = vld [vmem:[%s2969_s18 + $0x28] sm:$0xff] }
 0x144   : > { %v640_v57 = vmul.f32 %v2814_v55, %v637_v51 }
 0x146   : > { %v641_v61 = vadd.f32 %v640_v57, %v359_v56 }
 0x148   : > { %2817 = vtanh.f32 %v641_v61  ;;  %v946_v61 = vpop.permute.xlu0 %945 }
 0x149   : > { %vm947_vm6 = vcmp.eq.s32.totalorder %v946_v61, 1  ;;  %v1823_v61 = vld [vmem:[%s2969_s18 + $0x58] sm:$0xff] }
 0x152   : > { %v2818_v1 = vpop.eup %2817 }
 0x153   : > { %v644_v3 = vmul.f32 %v2818_v1, %v643_v0 }
 0x155   : > { %v646_v12 = vadd.f32 %v645_v6, %v644_v3 }
 0x157   : > { %v3292_v15 = vsel %vm653_vm3, %v646_v12, %v3160_v59  ;;  %v655_v16 = vsel %vm653_vm3, %v646_v12, 0.0  ;;  %v1531_v59 = vstv %s1247_s28 }
 0x158   : > { %656 = vst [vmem:[%s2964_s15] sm:$0xff] %v655_v16  ;;  %2206 = vmatmul.mubr.f32.vlgmr.msra.gmra.mrb[2].mxu1 %v3292_v15  ;;  %2241 = vmatmul.mubr.f32.vlgmr.msra.gmra.mrb[4].mxu0 %v3292_v15  ;;  %vm1532_vm5 = vcmp.lt.s32.totalorder %v1531_v59, %v3090_v37 }
 0x159   : > { %2610 = vmatpush3.bf16.msra.mxu1 %v3162_v60  ;;  %2275 = vmatprep.mubr.msk.f32.mxu1 %vm2889_vm0, %v2890_v7  ;;  %v1533_v21 = vsel %vm1532_vm5, 1, %v2891_v11 }
 0x15a   : > { %2611 = vmatprep.subr.bf16.mxu1 %v2888_v4  ;;  %2634 = vmatpush3.bf16.msra.mxu0 %v2989_v5 }
 0x15b   : > { %2635 = vmatprep.subr.bf16.mxu0 %v2888_v4  ;;  %2310 = vmatprep.mubr.msk.f32.mxu0 %vm2889_vm0, %v2890_v7 }
 0x15d   : > { %2613 = vmatpush3.bf16.msra.mxu1 %v3175_v63 }
 0x15e   : > { %2614 = vmatprep.subr.bf16.mxu1 %v2888_v4  ;;  %2637 = vmatpush3.bf16.msra.mxu0 %v3000_v8 }
 0x15f   : > { %2638 = vmatprep.subr.bf16.mxu0 %v2888_v4 }
 0x161   : > { %2616 = vmatpush3.bf16.msra.mxu1 %v3192_v2 }
 0x162   : > { %2617 = vmatprep.subr.bf16.mxu1 %v2888_v4  ;;  %2640 = vmatpush3.bf16.msra.mxu0 %v3029_v18 }
 0x163   : > { %2641 = vmatprep.subr.bf16.mxu0 %v2888_v4 }
 0x165   : > { %2619 = vmatpush3.bf16.msra.mxu1 %v3204_v9 }
 0x166   : > { %2620 = vmatprep.subr.bf16.mxu1 %v2888_v4  ;;  %2643 = vmatpush3.bf16.msra.mxu0 %v3049_v24 }
 0x167   : > { %2644 = vmatprep.subr.bf16.mxu0 %v2888_v4 }
 0x169   : > { %2622 = vmatpush3.bf16.msra.mxu1 %v3216_v13 }
 0x16a   : > { %2623 = vmatprep.subr.bf16.mxu1 %v2888_v4  ;;  %2646 = vmatpush3.bf16.msra.mxu0 %v3071_v31 }
 0x16b   : > { %2647 = vmatprep.subr.bf16.mxu0 %v2888_v4 }
 0x16d   : > { %2625 = vmatpush3.bf16.msra.mxu1 %v3228_v19 }
 0x16e   : > { %2626 = vmatprep.subr.bf16.mxu1 %v2888_v4  ;;  %2649 = vmatpush3.bf16.msra.mxu0 %v3099_v40 }
 0x16f   : > { %2650 = vmatprep.subr.bf16.mxu0 %v2888_v4 }
 0x171   : > { %2628 = vmatpush3.bf16.msra.mxu1 %v3240_v22 }
 0x172   : > { %2629 = vmatprep.subr.bf16.mxu1 %v2888_v4  ;;  %2652 = vmatpush3.bf16.msra.mxu0 %v3120_v47 }
 0x173   : > { %2653 = vmatprep.subr.bf16.mxu0 %v2888_v4 }
 0x175   : > { %2631 = vmatpush3.bf16.msra.mxu1 %v3252_v27 }
 0x176   : > { %2656 = vmatprep.subr.bf16.mxu1 %v2888_v4  ;;  %2655 = vmatpush3.bf16.msra.mxu0 %v3140_v53  ;;  %v1236_v53 = vstv %s952_s27 }
 0x177   : > { %2680 = vmatprep.subr.bf16.mxu0 %v2888_v4  ;;  %vm1237_vm4 = vcmp.lt.s32.totalorder %v1236_v53, %v3090_v37  ;;  %v1785_v53 = vld [vmem:[%s2969_s18 + $0x40] sm:$0xff] }
 0x178   : > { %2276 = vmatmul.mubr.f32.vlgmr.msra.gmra.mrb[4].mxu1 %v3292_v15  ;;  %v1238_v20 = vsel %vm1237_vm4, 1, %v2891_v11 }
 0x179   : > { %2658 = vmatpush3.bf16.msra.mxu1 %v3016_v14  ;;  %2345 = vmatprep.mubr.msk.f32.mxu1 %vm2889_vm0, %v2890_v7 }
 0x17a   : > { %2659 = vmatprep.subr.bf16.mxu1 %v2888_v4  ;;  %1240 = vperm.xlu1 %2808, %v1238_v20  }
 0x17d   : > { %2661 = vmatpush3.bf16.msra.mxu1 %v3026_v17 }
 0x17e   : > { %2662 = vmatprep.subr.bf16.mxu1 %v2888_v4  ;;  %1535 = vperm.xlu1 %2808, %v1533_v21  }
 0x181   : > { %2664 = vmatpush3.bf16.msra.mxu1 %v3046_v23 }
 0x182   : > { %2665 = vmatprep.subr.bf16.mxu1 %v2888_v4 }
 0x185   : > { %2667 = vmatpush3.bf16.msra.mxu1 %v3067_v29 }
 0x186   : > { %2668 = vmatprep.subr.bf16.mxu1 %v2888_v4 }
 0x189   : > { %2670 = vmatpush3.bf16.msra.mxu1 %v3094_v38 }
 0x18a   : > { %2671 = vmatprep.subr.bf16.mxu1 %v2888_v4 }
 0x18d   : > { %2673 = vmatpush3.bf16.msra.mxu1 %v3117_v46 }
 0x18e   : > { %2674 = vmatprep.subr.bf16.mxu1 %v2888_v4 }
 0x191   : > { %2676 = vmatpush3.bf16.msra.mxu1 %v3137_v52 }
 0x192   : > { %2677 = vmatprep.subr.bf16.mxu1 %v2888_v4 }
 0x195   : > { %2679 = vmatpush3.bf16.msra.mxu1 %v3157_v58 }
 0x196   : > { %2704 = vmatprep.subr.bf16.mxu1 %v2888_v4 }
 0x22b   : > { %v744_v26 = vpop.f32.mrb[2].mxu1  ;;  %v830_v28 = vpop.f32.mrb[4].mxu0 }
 0x22c   : > { %v850_v30 = vadd.f32 %v1745_v25, %v744_v26  ;;  %v2207_v32 = vpop.f32.mrb[3].mxu1  ;;  %v2242_v33 = vpop.f32.mrb[5].mxu0  ;;  %v857_v36 = vadd.f32 %v1746_v35, %v830_v28  ;;  %v1840_v28 = vld [vmem:[%s3490_s4 + $0x100] sm:$0xff] }
 0x22d   : > { %v1241_v32 = vpop.permute.xlu1 %1240 }
 0x22e   : > { %v1780_v34 = vmul.f32 -1.442695, %v850_v30  ;;  %v1781_v39 = vmul.f32 -1.442695, %v857_v36  ;;  %v1841_v30 = vld [vmem:[%s3490_s4 + $0x108] sm:$0xff]  ;;  %vm1242_vm7 = vcmp.eq.s32.totalorder %v1241_v32, 1 }
 0x22f   : > { %v2753_v36 = vpack.c.bf16 %v1841_v30, %v1840_v28 }
 0x230   : > { %2819 = vpow2.f32 %v1780_v34 }
 0x231   : > { %2821 = vpow2.f32 %v1781_v39  ;;  %v1842_v39 = vld [vmem:[%s3490_s4 + $0x110] sm:$0xff] }
 0x23a   : > { %v2820_v41 = vpop.eup %2819 }
 0x23b   : > { %v854_v37 = vadd.f32 1.0, %v2820_v41  ;;  %v2822_v42 = vpop.eup %2821  ;;  %v1843_v41 = vld [vmem:[%s3490_s4 + $0x118] sm:$0xff] }
 0x23c   : > { %v861_v43 = vadd.f32 1.0, %v2822_v42 }
 0x23d   : > { %2823 = vrcp.f32 %v854_v37 }
 0x23e   : > { %2825 = vrcp.f32 %v861_v43  ;;  %v2756_v43 = vpack.c.bf16 %v1843_v41, %v1842_v39 }
 0x247   : > { %v2824_v48 = vpop.eup %2823 }
 0x248   : > { %v2826_v55 = vpop.eup %2825 }
 0x249   : > { %v937_v56 = vsub.f32 1.0, %v2826_v55  ;;  %v939_v0 = vmul.f32 %v2826_v55, %v3292_v15 }
 0x24b   : > { %v930_v11 = vpop.f32.mrb[4].mxu1 }
 0x24c   : > { %v931_v44 = vadd.f32 %v3286_v49, %v930_v11  ;;  %v2277_v45 = vpop.f32.mrb[5].mxu1 }
 0x24e   : > { %v934_v51 = vmul.f32 %v2824_v48, %v931_v44  ;;  %v1822_v48 = vld [vmem:[%s2969_s18 + $0x50] sm:$0xff] }
 0x250   : > { %v935_v54 = vadd.f32 %v1747_v50, %v934_v51 }
 0x252   : > { %2827 = vtanh.f32 %v935_v54 }
 0x25c   : > { %v2828_v57 = vpop.eup %2827 }
 0x25d   : > { %v938_v62 = vmul.f32 %v2828_v57, %v937_v56 }
 0x25f   : > { %v940_v1 = vadd.f32 %v939_v0, %v938_v62 }
 0x261   : > { %v3364_v3 = vsel %vm947_vm6, %v940_v1, %v3292_v15  ;;  %v949_v6 = vsel %vm947_vm6, %v940_v1, 0.0 }
 0x262   : > { %2311 = vmatmul.mubr.f32.vlgmr.msra.gmra.mrb[6].mxu0 %v3364_v3  ;;  %2346 = vmatmul.mubr.f32.vlgmr.msra.gmra.mrb[6].mxu1 %v3364_v3  ;;  %1782 = vst [vmem:[%s2964_s15 + $0x8] sm:$0xff] %v949_v6 }
 0x263   : > { %2682 = vmatpush3.bf16.msra.mxu0 %v3162_v60  ;;  %2380 = vmatprep.mubr.msk.f32.mxu0 %vm2889_vm0, %v2890_v7 }
 0x264   : > { %2683 = vmatprep.subr.bf16.mxu0 %v2888_v4  ;;  %2706 = vmatpush3.bf16.msra.mxu1 %v2989_v5  ;;  %v1266_v5 = vld [vmem:[%s3490_s4 + $0x70] sm:$0xff] }
 0x265   : > { %2707 = vmatprep.subr.bf16.mxu1 %v2888_v4  ;;  %2415 = vmatprep.mubr.msk.f32.mxu1 %vm2889_vm0, %v2890_v7 }
 0x267   : > { %2685 = vmatpush3.bf16.msra.mxu0 %v3175_v63 }
 0x268   : > { %2686 = vmatprep.subr.bf16.mxu0 %v2888_v4  ;;  %2709 = vmatpush3.bf16.msra.mxu1 %v3000_v8  ;;  %v1267_v8 = vld [vmem:[%s3490_s4 + $0x78] sm:$0xff] }
 0x269   : > { %2710 = vmatprep.subr.bf16.mxu1 %v2888_v4 }
 0x26b   : > { %2688 = vmatpush3.bf16.msra.mxu0 %v3192_v2 }
 0x26c   : > { %2689 = vmatprep.subr.bf16.mxu0 %v2888_v4  ;;  %2712 = vmatpush3.bf16.msra.mxu1 %v3029_v18 }
 0x26d   : > { %2713 = vmatprep.subr.bf16.mxu1 %v2888_v4 }
 0x26f   : > { %2691 = vmatpush3.bf16.msra.mxu0 %v3204_v9 }
 0x270   : > { %2692 = vmatprep.subr.bf16.mxu0 %v2888_v4  ;;  %2715 = vmatpush3.bf16.msra.mxu1 %v3049_v24 }
 0x271   : > { %2716 = vmatprep.subr.bf16.mxu1 %v2888_v4 }
 0x273   : > { %2694 = vmatpush3.bf16.msra.mxu0 %v3216_v13 }
 0x274   : > { %2695 = vmatprep.subr.bf16.mxu0 %v2888_v4  ;;  %2718 = vmatpush3.bf16.msra.mxu1 %v3071_v31 }
 0x275   : > { %2719 = vmatprep.subr.bf16.mxu1 %v2888_v4 }
 0x277   : > { %2697 = vmatpush3.bf16.msra.mxu0 %v3228_v19 }
 0x278   : > { %2698 = vmatprep.subr.bf16.mxu0 %v2888_v4  ;;  %2721 = vmatpush3.bf16.msra.mxu1 %v3099_v40  ;;  %v1784_v40 = vld [vmem:[%s2969_s18 + $0x38] sm:$0xff] }
 0x279   : > { %2722 = vmatprep.subr.bf16.mxu1 %v2888_v4 }
 0x27b   : > { %2700 = vmatpush3.bf16.msra.mxu0 %v3240_v22 }
 0x27c   : > { %2701 = vmatprep.subr.bf16.mxu0 %v2888_v4  ;;  %2724 = vmatpush3.bf16.msra.mxu1 %v3120_v47 }
 0x27d   : > { %2725 = vmatprep.subr.bf16.mxu1 %v2888_v4 }
 0x27f   : > { %2703 = vmatpush3.bf16.msra.mxu0 %v3252_v27 }
 0x280   : > { %2728 = vmatprep.subr.bf16.mxu0 %v2888_v4 }
 0x282   : > { %2381 = vmatmul.mubr.f32.vlgmr.msra.gmra.mrb[8].mxu0 %v3364_v3 }
 0x283   : > { %2730 = vmatpush3.bf16.msra.mxu0 %v3016_v14  ;;  %2450 = vmatprep.mubr.msk.f32.mxu0 %vm2889_vm0, %v2890_v7  ;;  %v2726_v14 = vpack.c.bf16 %v1267_v8, %v1266_v5  ;;  %v1536_v5 = vpop.permute.xlu1 %1535 }
 0x284   : > { %2731 = vmatprep.subr.bf16.mxu0 %v2888_v4  ;;  %vm1537_vm8 = vcmp.eq.s32.totalorder %v1536_v5, 1 }
 0x285   : > { %2727 = vmatpush3.bf16.msra.mxu1 %v2726_v14 }
 0x286   : > { %2752 = vmatprep.subr.bf16.mxu1 %v2888_v4 }
 0x287   : > { %2733 = vmatpush3.bf16.msra.mxu0 %v3026_v17  ;;  %v1783_v17 = vld [vmem:[%s2969_s18 + $0x30] sm:$0xff] }
 0x288   : > { %2734 = vmatprep.subr.bf16.mxu0 %v2888_v4 }
 0x28b   : > { %2736 = vmatpush3.bf16.msra.mxu0 %v3046_v23 }
 0x28c   : > { %2737 = vmatprep.subr.bf16.mxu0 %v2888_v4 }
 0x28f   : > { %2739 = vmatpush3.bf16.msra.mxu0 %v3067_v29 }
 0x290   : > { %2740 = vmatprep.subr.bf16.mxu0 %v2888_v4 }
 0x293   : > { %2742 = vmatpush3.bf16.msra.mxu0 %v3094_v38 }
 0x294   : > { %2743 = vmatprep.subr.bf16.mxu0 %v2888_v4 }
 0x297   : > { %2745 = vmatpush3.bf16.msra.mxu0 %v3117_v46 }
 0x298   : > { %2746 = vmatprep.subr.bf16.mxu0 %v2888_v4 }
 0x29b   : > { %2748 = vmatpush3.bf16.msra.mxu0 %v3137_v52 }
 0x29c   : > { %2749 = vmatprep.subr.bf16.mxu0 %v2888_v4 }
 0x29f   : > { %2751 = vmatpush3.bf16.msra.mxu0 %v3157_v58 }
 0x335   : > { %v1039_v18 = vpop.f32.mrb[6].mxu0  ;;  %v1125_v23 = vpop.f32.mrb[6].mxu1 }
 0x336   : > { %v1145_v24 = vadd.f32 %v1783_v17, %v1039_v18  ;;  %v2312_v29 = vpop.f32.mrb[7].mxu0  ;;  %v2347_v31 = vpop.f32.mrb[7].mxu1  ;;  %v1152_v46 = vadd.f32 %v1784_v40, %v1125_v23 }
 0x338   : > { %v1818_v38 = vmul.f32 -1.442695, %v1145_v24  ;;  %v1819_v47 = vmul.f32 -1.442695, %v1152_v46 }
 0x33a   : > { %2829 = vpow2.f32 %v1818_v38 }
 0x33b   : > { %2831 = vpow2.f32 %v1819_v47 }
 0x344   : > { %v2830_v52 = vpop.eup %2829 }
 0x345   : > { %v1149_v58 = vadd.f32 1.0, %v2830_v52  ;;  %v2832_v60 = vpop.eup %2831 }
 0x346   : > { %v1156_v63 = vadd.f32 1.0, %v2832_v60 }
 0x347   : > { %2833 = vrcp.f32 %v1149_v58 }
 0x348   : > { %2835 = vrcp.f32 %v1156_v63 }
 0x351   : > { %v2834_v16 = vpop.eup %2833 }
 0x352   : > { %v2836_v21 = vpop.eup %2835 }
 0x353   : > { %v1232_v25 = vsub.f32 1.0, %v2836_v21  ;;  %v1234_v34 = vmul.f32 %v2836_v21, %v3364_v3 }
 0x355   : > { %v1225_v10 = vpop.f32.mrb[8].mxu0 }
 0x356   : > { %v1226_v12 = vadd.f32 %v3286_v49, %v1225_v10  ;;  %v2382_v15 = vpop.f32.mrb[9].mxu0 }
 0x358   : > { %v1229_v59 = vmul.f32 %v2834_v16, %v1226_v12 }
 0x35a   : > { %v1230_v20 = vadd.f32 %v1785_v53, %v1229_v59 }
 0x35c   : > { %2837 = vtanh.f32 %v1230_v20 }
 0x366   : > { %v2838_v26 = vpop.eup %2837 }
 0x367   : > { %v1233_v33 = vmul.f32 %v2838_v26, %v1232_v25 }
 0x369   : > { %v1235_v35 = vadd.f32 %v1234_v34, %v1233_v33 }
 0x36b   : > { %v1243_v37 = vsel %vm1242_vm7, %v1235_v35, %v3364_v3  ;;  %v1244_v42 = vsel %vm1242_vm7, %v1235_v35, 0.0 }
 0x36c   : > { %1820 = vst [vmem:[%s2964_s15 + $0x10] sm:$0xff] %v1244_v42  ;;  %2416 = vmatmul.mubr.f32.vlgmr.msra.gmra.mrb[8].mxu1 %v1243_v37  ;;  %2451 = vmatmul.mubr.f32.vlgmr.msra.gmra.mrb[10].mxu0 %v1243_v37 }
 0x36d   : > { %2754 = vmatpush3.bf16.msra.mxu1 %v2753_v36  ;;  %2485 = vmatprep.mubr.msk.f32.mxu1 %vm2889_vm0, %v2890_v7  ;;  %v1821_v7 = vld [vmem:[%s2969_s18 + $0x48] sm:$0xff] }
 0x36e   : > { %2755 = vmatprep.subr.bf16.mxu1 %v2888_v4 }
 0x371   : > { %2757 = vmatpush3.bf16.msra.mxu1 %v2756_v43 }
 0x372   : > { %2758 = vmatprep.subr.bf16.mxu1 %v2888_v4 }
 0x375   : > { %2760 = vmatpush3.bf16.msra.mxu1 %v3192_v2 }
 0x376   : > { %2761 = vmatprep.subr.bf16.mxu1 %v2888_v4 }
 0x379   : > { %2763 = vmatpush3.bf16.msra.mxu1 %v3204_v9 }
 0x37a   : > { %2764 = vmatprep.subr.bf16.mxu1 %v2888_v4 }
 0x37d   : > { %2766 = vmatpush3.bf16.msra.mxu1 %v3216_v13 }
 0x37e   : > { %2767 = vmatprep.subr.bf16.mxu1 %v2888_v4 }
 0x381   : > { %2769 = vmatpush3.bf16.msra.mxu1 %v3228_v19 }
 0x382   : > { %2770 = vmatprep.subr.bf16.mxu1 %v2888_v4 }
 0x385   : > { %2772 = vmatpush3.bf16.msra.mxu1 %v3240_v22 }
 0x386   : > { %2773 = vmatprep.subr.bf16.mxu1 %v2888_v4 }
 0x389   : > { %2775 = vmatpush3.bf16.msra.mxu1 %v3252_v27 }
 0x38c   : > { %2486 = vmatmul.mubr.f32.vlgmr.msra.gmra.mrb[10].mxu1 %v1243_v37 }
 0x43f   : > { %v1334_v2 = vpop.f32.mrb[8].mxu1  ;;  %v1420_v9 = vpop.f32.mrb[10].mxu0 }
 0x440   : > { %v1440_v11 = vadd.f32 %v1821_v7, %v1334_v2  ;;  %v2417_v44 = vpop.f32.mrb[9].mxu1  ;;  %v2452_v13 = vpop.f32.mrb[11].mxu0  ;;  %v1447_v19 = vadd.f32 %v1822_v48, %v1420_v9 }
 0x442   : > { %v1856_v45 = vmul.f32 -1.442695, %v1440_v11  ;;  %v1857_v50 = vmul.f32 -1.442695, %v1447_v19 }
 0x444   : > { %2839 = vpow2.f32 %v1856_v45 }
 0x445   : > { %2841 = vpow2.f32 %v1857_v50 }
 0x44e   : > { %v2840_v51 = vpop.eup %2839 }
 0x44f   : > { %v1444_v22 = vadd.f32 1.0, %v2840_v51  ;;  %v2842_v4 = vpop.eup %2841 }
 0x450   : > { %v1451_v54 = vadd.f32 1.0, %v2842_v4 }
 0x451   : > { %2843 = vrcp.f32 %v1444_v22 }
 0x452   : > { %2845 = vrcp.f32 %v1451_v54 }
 0x45b   : > { %v2844_v57 = vpop.eup %2843 }
 0x45c   : > { %v2846_v1 = vpop.eup %2845 }
 0x45d   : > { %v1527_v3 = vsub.f32 1.0, %v2846_v1  ;;  %v1529_v8 = vmul.f32 %v2846_v1, %v1243_v37 }
 0x45f   : > { %v1520_v27 = vpop.f32.mrb[10].mxu1 }
 0x460   : > { %v1521_v55 = vadd.f32 %v3286_v49, %v1520_v27  ;;  %v2487_v56 = vpop.f32.mrb[11].mxu1 }
 0x462   : > { %v1524_v62 = vmul.f32 %v2844_v57, %v1521_v55 }
 0x464   : > { %v1525_v0 = vadd.f32 %v1823_v61, %v1524_v62 }
 0x466   : > { %2847 = vtanh.f32 %v1525_v0 }
 0x470   : > { %v2848_v6 = vpop.eup %2847 }
 0x471   : > { %v1528_v14 = vmul.f32 %v2848_v6, %v1527_v3 }
 0x473   : > { %v1530_v17 = vadd.f32 %v1529_v8, %v1528_v14 }
 0x475   : > { %v1538_v18 = vsel %vm1537_vm8, %v1530_v17, %v1243_v37  ;;  %v1539_v23 = vsel %vm1537_vm8, %v1530_v17, 0.0 }
 0x476   : > { %1858 = vst [vmem:[%s2964_s15 + $0x18] sm:$0xff] %v1539_v23  ;;  %1542 = vst [vmem:[#allocation2] sm:$0xff] %v1538_v18 }
 0x477 PF: > { %p1859_p12 = scmp.lt.s32.totalorder %s2957_s9, %s2975_s21 }
 0x478   : > { %v2892_v49 = vmov (!%p1859_p12), 0.0  }
 0x479   : > { %1546 = sbr.rel (%p1859_p12) target bundleno = 1152 (0x480), region = 52  ;;  %1547 = vst [vmem:[%s2964_s15] sm:$0xff] (!%p1859_p12), %v2892_v49  ;;  %1548 = vst [vmem:[%s2964_s15 + $0x8] sm:$0xff] (!%p1859_p12), %v2892_v49 }
 0x47a   : > { %1549 = vst [vmem:[%s2964_s15 + $0x10] sm:$0xff] (!%p1859_p12), %v2892_v49  ;;  %1550 = vst [vmem:[%s2964_s15 + $0x18] sm:$0xff] (!%p1859_p12), %v2892_v49 }
 0x480 PF: > { %p1860_p13 = scmp.ne.s32.totalorder %s2877_s29, 1 }
 0x481   : > { %v1555_v24 = vld [vmem:[#allocation2] sm:$0xff] (!%p1860_p13) }
 0x482   : > { %1554 = sbr.rel (%p1860_p13) target bundleno = 1161 (0x489), region = 56  ;;  %1556 = vst [vmem:[%s3493_s7] sm:$0xff] (!%p1860_p13), %v1555_v24 }
 0x489 PF: > { %s24_s8 = sadd.s32 1, %s2885_s8   ;;  %s3494_s29 = smov %s2881_s30 }
 0x48a   : > { %p21_p0 = scmp.ge.s32.totalorder %s24_s8, 4   ;;  %s3495_s30 = smov %s3497_s0 }
 0x48c   :  { %23 = sbr.rel (!%p21_p0) target bundleno = 17 (0x11), region = 112 }

</bundles_post_ra>
